<compile_context>
chip_gen: v5e
topology: v5e:2x2
jax: 0.10.0
libtpu: 0.0.40
codegen_flags: <defaults>
</compile_context>

<pallas_src>
import jax
import jax.numpy as jnp
from jax.experimental import pallas as pl
from jax.experimental.pallas import tpu as pltpu


def simclr_kernel(x_ref, wc_ref, bc_ref, w1_ref, b1_ref, w2_ref, b2_ref,
                  z_ref, h_ref):
    """One grid step = tile_b batch elements.

    x_ref : (tile_b, C*HW) f32 VMEM   pixels, channel-major, lane-dense rows
    wc_ref: (C*F,)         f32 SMEM   backbone conv weight (1/HW folded in)
    bc_ref: (F,)           f32 SMEM   backbone conv bias   (1/HW folded in)
    w1_ref: (F, P), b1_ref: (1, P)    projection head layer 1 (VMEM)
    w2_ref: (P, P), b2_ref: (1, P)    projection head layer 2 (VMEM)
    z_ref : (tile_b, P)               projected embeddings for this block
    h_ref : (tile_b, F) f32 VMEM scratch for the pooled backbone features
    """
    tile_b = x_ref.shape[0]
    F = bc_ref.shape[0]
    C = wc_ref.shape[0] // F
    HW = x_ref.shape[1] // C

    # Load each channel slice of x exactly once: (tile_b, HW), lane-dense,
    # aligned (HW is a multiple of 128).  No whole-tensor upcast / copy.
    xc = [x_ref[:, c * HW:(c + 1) * HW] for c in range(C)]

    # ---- streamed backbone: pointwise conv C->F, ReLU, global average pool.
    # For each feature f: C scalar-splat FMAs on (tile_b, HW) slabs (VPU),
    # scalar bias add, ReLU, lane-axis reduce -> one (tile_b, 1) column of the
    # pooled result.  Nothing bigger than one slab is ever live.
    for f in range(F):                                   # static unroll, F = 32
        acc = xc[0] * wc_ref[f]                          # wc_ref[c*F + f], c = 0
        for c in range(1, C):                            # static unroll, C = 4
            acc = acc + xc[c] * wc_ref[c * F + f]
        y = jnp.maximum(acc + bc_ref[f], 0.0)            # (tile_b, HW)
        h_ref[:, f:f + 1] = jnp.sum(y, axis=1, keepdims=True)

    # ---- projection head: Linear -> ReLU -> Linear (f32 accumulate) ----
    h = h_ref[...]                                       # (tile_b, F)
    a = jnp.dot(h, w1_ref[...], preferred_element_type=jnp.float32) + b1_ref[...]
    a = jnp.maximum(a, 0.0)                              # (tile_b, P)
    z_ref[...] = jnp.dot(a, w2_ref[...],
                         preferred_element_type=jnp.float32) + b2_ref[...]


def _pick_tile_b(B, cap=128):
    """Batch-tile heuristic.

    Small B: one block (grid is a serial loop on single-TC chips, so splitting
    tiny batches only adds ~0.35us/step overhead).  Large B: largest
    multiple-of-8 divisor of B <= cap, so blocks are big, (8,128)-legal, need
    no padding, and nb >= 2 keeps both v7x TensorCores busy.
    """
    if B <= cap:
        return B
    for t in range(cap, 7, -8):          # 128, 120, ..., 8
        if B % t == 0:
            return t
    return cap                            # rare fallback (prime-ish B): pad


def prepare_params(params, H, W):
    """One-time parameter prep (call at init, NOT per forward step).

    Folds the 1/(H*W) global-average-pool factor into the conv weight/bias
    (valid since ReLU is positively homogeneous) and flattens the conv params
    for SMEM scalar access.
    """
    inv_hw = 1.0 / float(H * W)
    C, F = params["wc"].shape
    return {
        "wc_flat": (params["wc"] * inv_hw).reshape(C * F),   # row-major (c, f)
        "bc": (params["bc"] * inv_hw).reshape(F),
        "w1": params["w1"],
        "b1": params["b1"].reshape(1, -1),
        "w2": params["w2"],
        "b2": params["b2"].reshape(1, -1),
    }


def simclr_forward(x_nchw, prep, tile_b=None):
    B, C, H, W = x_nchw.shape
    HW = H * W
    F = prep["w1"].shape[0]
    P = prep["w2"].shape[1]

    # NCHW -> (B, C*H*W) is a contiguous reshape (no HBM transpose / copy).
    # Feed f32 directly: a wrapper-side bf16 cast would be an extra HBM pass.
    x = x_nchw.reshape(B, C * HW)

    if tile_b is None:
        tile_b = _pick_tile_b(B)
    if B % tile_b:
        # Rare fallback only (e.g. prime batch > cap); common paths never pad.
        Bp = pl.cdiv(B, tile_b) * tile_b
        x = jnp.pad(x, ((0, Bp - B), (0, 0)))
    else:
        Bp = B
    nb = Bp // tile_b

    out = pl.pallas_call(
        simclr_kernel,
        out_shape=jax.ShapeDtypeStruct((Bp, P), jnp.float32),
        grid_spec=pltpu.PrefetchScalarGridSpec(
            num_scalar_prefetch=0,
            grid=(nb,),
            in_specs=[
                pl.BlockSpec((tile_b, C * HW), lambda b: (b, 0)),        # pixels
                pl.BlockSpec(memory_space=pltpu.MemorySpace.SMEM),       # conv W (flat)
                pl.BlockSpec(memory_space=pltpu.MemorySpace.SMEM),       # conv bias
                pl.BlockSpec((F, P), lambda b: (0, 0)),                  # proj W1
                pl.BlockSpec((1, P), lambda b: (0, 0)),                  # proj b1
                pl.BlockSpec((P, P), lambda b: (0, 0)),                  # proj W2
                pl.BlockSpec((1, P), lambda b: (0, 0)),                  # proj b2
            ],
            out_specs=pl.BlockSpec((tile_b, P), lambda b: (b, 0)),
            scratch_shapes=[pltpu.VMEM((tile_b, F), jnp.float32)],
        ),
        compiler_params=pltpu.CompilerParams(
            dimension_semantics=("parallel",),
        ),
    )(x, prep["wc_flat"], prep["bc"], prep["w1"], prep["b1"],
      prep["w2"], prep["b2"])

    return out[:B]


def simclr_reference(x_nchw, params):
    """Pure-JAX f32 reference for correctness checking (unfolded params)."""
    B, C, H, W = x_nchw.shape
    x = x_nchw.reshape(B, C, H * W)
    y = jnp.maximum(jnp.einsum("bch,cf->bhf", x, params["wc"]) + params["bc"], 0.0)
    h = jnp.mean(y, axis=1)                                      # (B, F)
    a = jnp.maximum(h @ params["w1"] + params["b1"], 0.0)        # (B, P)
    return a @ params["w2"] + params["b2"]                       # (B, P)


def init_params(key, in_channels, feature_dim, projection_dim):
    ks = jax.random.split(key, 6)
    scale = 0.1
    return {
        "wc": scale * jax.random.normal(ks[0], (in_channels, feature_dim), jnp.float32),
        "bc": scale * jax.random.normal(ks[1], (1, feature_dim), jnp.float32),
        "w1": scale * jax.random.normal(ks[2], (feature_dim, projection_dim), jnp.float32),
        "b1": scale * jax.random.normal(ks[3], (1, projection_dim), jnp.float32),
        "w2": scale * jax.random.normal(ks[4], (projection_dim, projection_dim), jnp.float32),
        "b2": scale * jax.random.normal(ks[5], (1, projection_dim), jnp.float32),
    }


if __name__ == "__main__":
    # Small deterministic shapes: batch=2, channels=4, spatial=16x16,
    # feature_dim=32, projection_dim=16.
    B, C, H, W = 2, 4, 16, 16
    FEATURE_DIM, PROJECTION_DIM = 32, 16

    key = jax.random.PRNGKey(0)
    k_x, k_p = jax.random.split(key)
    x = jax.random.normal(k_x, (B, C, H, W), jnp.float32)
    params = init_params(k_p, C, FEATURE_DIM, PROJECTION_DIM)
    prep = prepare_params(params, H, W)          # one-time param prep

    z = simclr_forward(x, prep)
    z = jax.block_until_ready(z)

    z_ref = simclr_reference(x, params)
    assert z.shape == (B, PROJECTION_DIM)
    # Everything is f32 end-to-end now (1/HW fold is an exact power-of-two
    # scale), so the tolerance can be tight.
    assert jnp.allclose(z, z_ref, atol=1e-3, rtol=1e-3), "mismatch vs reference"

    print("KERNEL_OK")
</pallas_src>

<mosaic_0001>
module attributes {stable_mosaic.version = 11 : i64} {
  func.func @simclr_kernel(%arg0: i32, %arg1: memref<2x1024xf32, #tpu.memory_space<vmem>>, %arg2: memref<128xf32, #tpu.memory_space<smem>>, %arg3: memref<32xf32, #tpu.memory_space<smem>>, %arg4: memref<32x16xf32, #tpu.memory_space<vmem>>, %arg5: memref<1x16xf32, #tpu.memory_space<vmem>>, %arg6: memref<16x16xf32, #tpu.memory_space<vmem>>, %arg7: memref<1x16xf32, #tpu.memory_space<vmem>>, %arg8: memref<2x16xf32, #tpu.memory_space<vmem>>, %arg9: memref<2x32xf32, #tpu.memory_space<vmem>>) attributes {dimension_semantics = [#tpu.dimension_semantics<parallel>], iteration_bounds = array<i64: 1>, scalar_prefetch = 0 : i64, scratch_operands = 1 : i64, tpu.core_type = #tpu.core_type<tc>, window_params = [{transform_indices = @transform_0, window_bounds = array<i64: 2, 1024>}, {transform_indices = @transform_1, window_bounds = array<i64: 128>}, {transform_indices = @transform_2, window_bounds = array<i64: 32>}, {pipeline_mode = #tpu.pipeline_mode<synchronous>, transform_indices = @transform_3, window_bounds = array<i64: 32, 16>}, {pipeline_mode = #tpu.pipeline_mode<synchronous>, transform_indices = @transform_4, window_bounds = array<i64: 1, 16>}, {pipeline_mode = #tpu.pipeline_mode<synchronous>, transform_indices = @transform_5, window_bounds = array<i64: 16, 16>}, {pipeline_mode = #tpu.pipeline_mode<synchronous>, transform_indices = @transform_6, window_bounds = array<i64: 1, 16>}, {transform_indices = @transform_7, window_bounds = array<i64: 2, 16>}]} {
    %c0 = arith.constant 0 : index
    %c0_0 = arith.constant 0 : index
    %0 = vector.load %arg1[%c0, %c0_0] : memref<2x1024xf32, #tpu.memory_space<vmem>>, vector<2x256xf32>
    %c0_1 = arith.constant 0 : index
    %c256 = arith.constant 256 : index
    %1 = vector.load %arg1[%c0_1, %c256] : memref<2x1024xf32, #tpu.memory_space<vmem>>, vector<2x256xf32>
    %c0_2 = arith.constant 0 : index
    %c512 = arith.constant 512 : index
    %2 = vector.load %arg1[%c0_2, %c512] : memref<2x1024xf32, #tpu.memory_space<vmem>>, vector<2x256xf32>
    %c0_3 = arith.constant 0 : index
    %c768 = arith.constant 768 : index
    %3 = vector.load %arg1[%c0_3, %c768] : memref<2x1024xf32, #tpu.memory_space<vmem>>, vector<2x256xf32>
    %c0_4 = arith.constant 0 : index
    %4 = memref.load %arg2[%c0_4] : memref<128xf32, #tpu.memory_space<smem>>
    %5 = vector.broadcast %4 : f32 to vector<2x256xf32>
    %6 = arith.mulf %0, %5 : vector<2x256xf32>
    %c32 = arith.constant 32 : index
    %7 = memref.load %arg2[%c32] : memref<128xf32, #tpu.memory_space<smem>>
    %8 = vector.broadcast %7 : f32 to vector<2x256xf32>
    %9 = arith.mulf %1, %8 : vector<2x256xf32>
    %10 = arith.addf %6, %9 : vector<2x256xf32>
    %c64 = arith.constant 64 : index
    %11 = memref.load %arg2[%c64] : memref<128xf32, #tpu.memory_space<smem>>
    %12 = vector.broadcast %11 : f32 to vector<2x256xf32>
    %13 = arith.mulf %2, %12 : vector<2x256xf32>
    %14 = arith.addf %10, %13 : vector<2x256xf32>
    %c96 = arith.constant 96 : index
    %15 = memref.load %arg2[%c96] : memref<128xf32, #tpu.memory_space<smem>>
    %16 = vector.broadcast %15 : f32 to vector<2x256xf32>
    %17 = arith.mulf %3, %16 : vector<2x256xf32>
    %18 = arith.addf %14, %17 : vector<2x256xf32>
    %c0_5 = arith.constant 0 : index
    %19 = memref.load %arg3[%c0_5] : memref<32xf32, #tpu.memory_space<smem>>
    %20 = vector.broadcast %19 : f32 to vector<2x256xf32>
    %21 = arith.addf %18, %20 : vector<2x256xf32>
    %cst = arith.constant 0.000000e+00 : f32
    %22 = vector.broadcast %cst : f32 to vector<2x256xf32>
    %23 = arith.maximumf %21, %22 : vector<2x256xf32>
    %cst_6 = arith.constant dense<0.000000e+00> : vector<2xf32>
    %24 = vector.multi_reduction <add>, %23, %cst_6 [1] : vector<2x256xf32> to vector<2xf32>
    %25 = vector.shape_cast %24 : vector<2xf32> to vector<2x1xf32>
    %c0_7 = arith.constant 0 : index
    %c0_8 = arith.constant 0 : index
    %26 = vector.load %arg9[%c0_7, %c0_8] : memref<2x32xf32, #tpu.memory_space<vmem>>, vector<2x1xf32>
    tpu.vector_store %arg9[%c0_7, %c0_8], %25 {strides = array<i32>} : memref<2x32xf32, #tpu.memory_space<vmem>>, vector<2x1xf32>,
    %c1 = arith.constant 1 : index
    %27 = memref.load %arg2[%c1] : memref<128xf32, #tpu.memory_space<smem>>
    %28 = vector.broadcast %27 : f32 to vector<2x256xf32>
    %29 = arith.mulf %0, %28 : vector<2x256xf32>
    %c33 = arith.constant 33 : index
    %30 = memref.load %arg2[%c33] : memref<128xf32, #tpu.memory_space<smem>>
    %31 = vector.broadcast %30 : f32 to vector<2x256xf32>
    %32 = arith.mulf %1, %31 : vector<2x256xf32>
    %33 = arith.addf %29, %32 : vector<2x256xf32>
    %c65 = arith.constant 65 : index
    %34 = memref.load %arg2[%c65] : memref<128xf32, #tpu.memory_space<smem>>
    %35 = vector.broadcast %34 : f32 to vector<2x256xf32>
    %36 = arith.mulf %2, %35 : vector<2x256xf32>
    %37 = arith.addf %33, %36 : vector<2x256xf32>
    %c97 = arith.constant 97 : index
    %38 = memref.load %arg2[%c97] : memref<128xf32, #tpu.memory_space<smem>>
    %39 = vector.broadcast %38 : f32 to vector<2x256xf32>
    %40 = arith.mulf %3, %39 : vector<2x256xf32>
    %41 = arith.addf %37, %40 : vector<2x256xf32>
    %c1_9 = arith.constant 1 : index
    %42 = memref.load %arg3[%c1_9] : memref<32xf32, #tpu.memory_space<smem>>
    %43 = vector.broadcast %42 : f32 to vector<2x256xf32>
    %44 = arith.addf %41, %43 : vector<2x256xf32>
    %cst_10 = arith.constant 0.000000e+00 : f32
    %45 = vector.broadcast %cst_10 : f32 to vector<2x256xf32>
    %46 = arith.maximumf %44, %45 : vector<2x256xf32>
    %cst_11 = arith.constant dense<0.000000e+00> : vector<2xf32>
    %47 = vector.multi_reduction <add>, %46, %cst_11 [1] : vector<2x256xf32> to vector<2xf32>
    %48 = vector.shape_cast %47 : vector<2xf32> to vector<2x1xf32>
    %c0_12 = arith.constant 0 : index
    %c1_13 = arith.constant 1 : index
    %49 = vector.load %arg9[%c0_12, %c1_13] : memref<2x32xf32, #tpu.memory_space<vmem>>, vector<2x1xf32>
    tpu.vector_store %arg9[%c0_12, %c1_13], %48 {strides = array<i32>} : memref<2x32xf32, #tpu.memory_space<vmem>>, vector<2x1xf32>,
    %c2 = arith.constant 2 : index
    %50 = memref.load %arg2[%c2] : memref<128xf32, #tpu.memory_space<smem>>
    %51 = vector.broadcast %50 : f32 to vector<2x256xf32>
    %52 = arith.mulf %0, %51 : vector<2x256xf32>
    %c34 = arith.constant 34 : index
    %53 = memref.load %arg2[%c34] : memref<128xf32, #tpu.memory_space<smem>>
    %54 = vector.broadcast %53 : f32 to vector<2x256xf32>
    %55 = arith.mulf %1, %54 : vector<2x256xf32>
    %56 = arith.addf %52, %55 : vector<2x256xf32>
    %c66 = arith.constant 66 : index
    %57 = memref.load %arg2[%c66] : memref<128xf32, #tpu.memory_space<smem>>
    %58 = vector.broadcast %57 : f32 to vector<2x256xf32>
    %59 = arith.mulf %2, %58 : vector<2x256xf32>
    %60 = arith.addf %56, %59 : vector<2x256xf32>
    %c98 = arith.constant 98 : index
    %61 = memref.load %arg2[%c98] : memref<128xf32, #tpu.memory_space<smem>>
    %62 = vector.broadcast %61 : f32 to vector<2x256xf32>
    %63 = arith.mulf %3, %62 : vector<2x256xf32>
    %64 = arith.addf %60, %63 : vector<2x256xf32>
    %c2_14 = arith.constant 2 : index
    %65 = memref.load %arg3[%c2_14] : memref<32xf32, #tpu.memory_space<smem>>
    %66 = vector.broadcast %65 : f32 to vector<2x256xf32>
    %67 = arith.addf %64, %66 : vector<2x256xf32>
    %cst_15 = arith.constant 0.000000e+00 : f32
    %68 = vector.broadcast %cst_15 : f32 to vector<2x256xf32>
    %69 = arith.maximumf %67, %68 : vector<2x256xf32>
    %cst_16 = arith.constant dense<0.000000e+00> : vector<2xf32>
    %70 = vector.multi_reduction <add>, %69, %cst_16 [1] : vector<2x256xf32> to vector<2xf32>
    %71 = vector.shape_cast %70 : vector<2xf32> to vector<2x1xf32>
    %c0_17 = arith.constant 0 : index
    %c2_18 = arith.constant 2 : index
    %72 = vector.load %arg9[%c0_17, %c2_18] : memref<2x32xf32, #tpu.memory_space<vmem>>, vector<2x1xf32>
    tpu.vector_store %arg9[%c0_17, %c2_18], %71 {strides = array<i32>} : memref<2x32xf32, #tpu.memory_space<vmem>>, vector<2x1xf32>,
    %c3 = arith.constant 3 : index
    %73 = memref.load %arg2[%c3] : memref<128xf32, #tpu.memory_space<smem>>
    %74 = vector.broadcast %73 : f32 to vector<2x256xf32>
    %75 = arith.mulf %0, %74 : vector<2x256xf32>
    %c35 = arith.constant 35 : index
    %76 = memref.load %arg2[%c35] : memref<128xf32, #tpu.memory_space<smem>>
    %77 = vector.broadcast %76 : f32 to vector<2x256xf32>
    %78 = arith.mulf %1, %77 : vector<2x256xf32>
    %79 = arith.addf %75, %78 : vector<2x256xf32>
    %c67 = arith.constant 67 : index
    %80 = memref.load %arg2[%c67] : memref<128xf32, #tpu.memory_space<smem>>
    %81 = vector.broadcast %80 : f32 to vector<2x256xf32>
    %82 = arith.mulf %2, %81 : vector<2x256xf32>
    %83 = arith.addf %79, %82 : vector<2x256xf32>
    %c99 = arith.constant 99 : index
    %84 = memref.load %arg2[%c99] : memref<128xf32, #tpu.memory_space<smem>>
    %85 = vector.broadcast %84 : f32 to vector<2x256xf32>
    %86 = arith.mulf %3, %85 : vector<2x256xf32>
    %87 = arith.addf %83, %86 : vector<2x256xf32>
    %c3_19 = arith.constant 3 : index
    %88 = memref.load %arg3[%c3_19] : memref<32xf32, #tpu.memory_space<smem>>
    %89 = vector.broadcast %88 : f32 to vector<2x256xf32>
    %90 = arith.addf %87, %89 : vector<2x256xf32>
    %cst_20 = arith.constant 0.000000e+00 : f32
    %91 = vector.broadcast %cst_20 : f32 to vector<2x256xf32>
    %92 = arith.maximumf %90, %91 : vector<2x256xf32>
    %cst_21 = arith.constant dense<0.000000e+00> : vector<2xf32>
    %93 = vector.multi_reduction <add>, %92, %cst_21 [1] : vector<2x256xf32> to vector<2xf32>
    %94 = vector.shape_cast %93 : vector<2xf32> to vector<2x1xf32>
    %c0_22 = arith.constant 0 : index
    %c3_23 = arith.constant 3 : index
    %95 = vector.load %arg9[%c0_22, %c3_23] : memref<2x32xf32, #tpu.memory_space<vmem>>, vector<2x1xf32>
    tpu.vector_store %arg9[%c0_22, %c3_23], %94 {strides = array<i32>} : memref<2x32xf32, #tpu.memory_space<vmem>>, vector<2x1xf32>,
    %c4 = arith.constant 4 : index
    %96 = memref.load %arg2[%c4] : memref<128xf32, #tpu.memory_space<smem>>
    %97 = vector.broadcast %96 : f32 to vector<2x256xf32>
    %98 = arith.mulf %0, %97 : vector<2x256xf32>
    %c36 = arith.constant 36 : index
    %99 = memref.load %arg2[%c36] : memref<128xf32, #tpu.memory_space<smem>>
    %100 = vector.broadcast %99 : f32 to vector<2x256xf32>
    %101 = arith.mulf %1, %100 : vector<2x256xf32>
    %102 = arith.addf %98, %101 : vector<2x256xf32>
    %c68 = arith.constant 68 : index
    %103 = memref.load %arg2[%c68] : memref<128xf32, #tpu.memory_space<smem>>
    %104 = vector.broadcast %103 : f32 to vector<2x256xf32>
    %105 = arith.mulf %2, %104 : vector<2x256xf32>
    %106 = arith.addf %102, %105 : vector<2x256xf32>
    %c100 = arith.constant 100 : index
    %107 = memref.load %arg2[%c100] : memref<128xf32, #tpu.memory_space<smem>>
    %108 = vector.broadcast %107 : f32 to vector<2x256xf32>
    %109 = arith.mulf %3, %108 : vector<2x256xf32>
    %110 = arith.addf %106, %109 : vector<2x256xf32>
    %c4_24 = arith.constant 4 : index
    %111 = memref.load %arg3[%c4_24] : memref<32xf32, #tpu.memory_space<smem>>
    %112 = vector.broadcast %111 : f32 to vector<2x256xf32>
    %113 = arith.addf %110, %112 : vector<2x256xf32>
    %cst_25 = arith.constant 0.000000e+00 : f32
    %114 = vector.broadcast %cst_25 : f32 to vector<2x256xf32>
    %115 = arith.maximumf %113, %114 : vector<2x256xf32>
    %cst_26 = arith.constant dense<0.000000e+00> : vector<2xf32>
    %116 = vector.multi_reduction <add>, %115, %cst_26 [1] : vector<2x256xf32> to vector<2xf32>
    %117 = vector.shape_cast %116 : vector<2xf32> to vector<2x1xf32>
    %c0_27 = arith.constant 0 : index
    %c4_28 = arith.constant 4 : index
    %118 = vector.load %arg9[%c0_27, %c4_28] : memref<2x32xf32, #tpu.memory_space<vmem>>, vector<2x1xf32>
    tpu.vector_store %arg9[%c0_27, %c4_28], %117 {strides = array<i32>} : memref<2x32xf32, #tpu.memory_space<vmem>>, vector<2x1xf32>,
    %c5 = arith.constant 5 : index
    %119 = memref.load %arg2[%c5] : memref<128xf32, #tpu.memory_space<smem>>
    %120 = vector.broadcast %119 : f32 to vector<2x256xf32>
    %121 = arith.mulf %0, %120 : vector<2x256xf32>
    %c37 = arith.constant 37 : index
    %122 = memref.load %arg2[%c37] : memref<128xf32, #tpu.memory_space<smem>>
    %123 = vector.broadcast %122 : f32 to vector<2x256xf32>
    %124 = arith.mulf %1, %123 : vector<2x256xf32>
    %125 = arith.addf %121, %124 : vector<2x256xf32>
    %c69 = arith.constant 69 : index
    %126 = memref.load %arg2[%c69] : memref<128xf32, #tpu.memory_space<smem>>
    %127 = vector.broadcast %126 : f32 to vector<2x256xf32>
    %128 = arith.mulf %2, %127 : vector<2x256xf32>
    %129 = arith.addf %125, %128 : vector<2x256xf32>
    %c101 = arith.constant 101 : index
    %130 = memref.load %arg2[%c101] : memref<128xf32, #tpu.memory_space<smem>>
    %131 = vector.broadcast %130 : f32 to vector<2x256xf32>
    %132 = arith.mulf %3, %131 : vector<2x256xf32>
    %133 = arith.addf %129, %132 : vector<2x256xf32>
    %c5_29 = arith.constant 5 : index
    %134 = memref.load %arg3[%c5_29] : memref<32xf32, #tpu.memory_space<smem>>
    %135 = vector.broadcast %134 : f32 to vector<2x256xf32>
    %136 = arith.addf %133, %135 : vector<2x256xf32>
    %cst_30 = arith.constant 0.000000e+00 : f32
    %137 = vector.broadcast %cst_30 : f32 to vector<2x256xf32>
    %138 = arith.maximumf %136, %137 : vector<2x256xf32>
    %cst_31 = arith.constant dense<0.000000e+00> : vector<2xf32>
    %139 = vector.multi_reduction <add>, %138, %cst_31 [1] : vector<2x256xf32> to vector<2xf32>
    %140 = vector.shape_cast %139 : vector<2xf32> to vector<2x1xf32>
    %c0_32 = arith.constant 0 : index
    %c5_33 = arith.constant 5 : index
    %141 = vector.load %arg9[%c0_32, %c5_33] : memref<2x32xf32, #tpu.memory_space<vmem>>, vector<2x1xf32>
    tpu.vector_store %arg9[%c0_32, %c5_33], %140 {strides = array<i32>} : memref<2x32xf32, #tpu.memory_space<vmem>>, vector<2x1xf32>,
    %c6 = arith.constant 6 : index
    %142 = memref.load %arg2[%c6] : memref<128xf32, #tpu.memory_space<smem>>
    %143 = vector.broadcast %142 : f32 to vector<2x256xf32>
    %144 = arith.mulf %0, %143 : vector<2x256xf32>
    %c38 = arith.constant 38 : index
    %145 = memref.load %arg2[%c38] : memref<128xf32, #tpu.memory_space<smem>>
    %146 = vector.broadcast %145 : f32 to vector<2x256xf32>
    %147 = arith.mulf %1, %146 : vector<2x256xf32>
    %148 = arith.addf %144, %147 : vector<2x256xf32>
    %c70 = arith.constant 70 : index
    %149 = memref.load %arg2[%c70] : memref<128xf32, #tpu.memory_space<smem>>
    %150 = vector.broadcast %149 : f32 to vector<2x256xf32>
    %151 = arith.mulf %2, %150 : vector<2x256xf32>
    %152 = arith.addf %148, %151 : vector<2x256xf32>
    %c102 = arith.constant 102 : index
    %153 = memref.load %arg2[%c102] : memref<128xf32, #tpu.memory_space<smem>>
    %154 = vector.broadcast %153 : f32 to vector<2x256xf32>
    %155 = arith.mulf %3, %154 : vector<2x256xf32>
    %156 = arith.addf %152, %155 : vector<2x256xf32>
    %c6_34 = arith.constant 6 : index
    %157 = memref.load %arg3[%c6_34] : memref<32xf32, #tpu.memory_space<smem>>
    %158 = vector.broadcast %157 : f32 to vector<2x256xf32>
    %159 = arith.addf %156, %158 : vector<2x256xf32>
    %cst_35 = arith.constant 0.000000e+00 : f32
    %160 = vector.broadcast %cst_35 : f32 to vector<2x256xf32>
    %161 = arith.maximumf %159, %160 : vector<2x256xf32>
    %cst_36 = arith.constant dense<0.000000e+00> : vector<2xf32>
    %162 = vector.multi_reduction <add>, %161, %cst_36 [1] : vector<2x256xf32> to vector<2xf32>
    %163 = vector.shape_cast %162 : vector<2xf32> to vector<2x1xf32>
    %c0_37 = arith.constant 0 : index
    %c6_38 = arith.constant 6 : index
    %164 = vector.load %arg9[%c0_37, %c6_38] : memref<2x32xf32, #tpu.memory_space<vmem>>, vector<2x1xf32>
    tpu.vector_store %arg9[%c0_37, %c6_38], %163 {strides = array<i32>} : memref<2x32xf32, #tpu.memory_space<vmem>>, vector<2x1xf32>,
    %c7 = arith.constant 7 : index
    %165 = memref.load %arg2[%c7] : memref<128xf32, #tpu.memory_space<smem>>
    %166 = vector.broadcast %165 : f32 to vector<2x256xf32>
    %167 = arith.mulf %0, %166 : vector<2x256xf32>
    %c39 = arith.constant 39 : index
    %168 = memref.load %arg2[%c39] : memref<128xf32, #tpu.memory_space<smem>>
    %169 = vector.broadcast %168 : f32 to vector<2x256xf32>
    %170 = arith.mulf %1, %169 : vector<2x256xf32>
    %171 = arith.addf %167, %170 : vector<2x256xf32>
    %c71 = arith.constant 71 : index
    %172 = memref.load %arg2[%c71] : memref<128xf32, #tpu.memory_space<smem>>
    %173 = vector.broadcast %172 : f32 to vector<2x256xf32>
    %174 = arith.mulf %2, %173 : vector<2x256xf32>
    %175 = arith.addf %171, %174 : vector<2x256xf32>
    %c103 = arith.constant 103 : index
    %176 = memref.load %arg2[%c103] : memref<128xf32, #tpu.memory_space<smem>>
    %177 = vector.broadcast %176 : f32 to vector<2x256xf32>
    %178 = arith.mulf %3, %177 : vector<2x256xf32>
    %179 = arith.addf %175, %178 : vector<2x256xf32>
    %c7_39 = arith.constant 7 : index
    %180 = memref.load %arg3[%c7_39] : memref<32xf32, #tpu.memory_space<smem>>
    %181 = vector.broadcast %180 : f32 to vector<2x256xf32>
    %182 = arith.addf %179, %181 : vector<2x256xf32>
    %cst_40 = arith.constant 0.000000e+00 : f32
    %183 = vector.broadcast %cst_40 : f32 to vector<2x256xf32>
    %184 = arith.maximumf %182, %183 : vector<2x256xf32>
    %cst_41 = arith.constant dense<0.000000e+00> : vector<2xf32>
    %185 = vector.multi_reduction <add>, %184, %cst_41 [1] : vector<2x256xf32> to vector<2xf32>
    %186 = vector.shape_cast %185 : vector<2xf32> to vector<2x1xf32>
    %c0_42 = arith.constant 0 : index
    %c7_43 = arith.constant 7 : index
    %187 = vector.load %arg9[%c0_42, %c7_43] : memref<2x32xf32, #tpu.memory_space<vmem>>, vector<2x1xf32>
    tpu.vector_store %arg9[%c0_42, %c7_43], %186 {strides = array<i32>} : memref<2x32xf32, #tpu.memory_space<vmem>>, vector<2x1xf32>,
    %c8 = arith.constant 8 : index
    %188 = memref.load %arg2[%c8] : memref<128xf32, #tpu.memory_space<smem>>
    %189 = vector.broadcast %188 : f32 to vector<2x256xf32>
    %190 = arith.mulf %0, %189 : vector<2x256xf32>
    %c40 = arith.constant 40 : index
    %191 = memref.load %arg2[%c40] : memref<128xf32, #tpu.memory_space<smem>>
    %192 = vector.broadcast %191 : f32 to vector<2x256xf32>
    %193 = arith.mulf %1, %192 : vector<2x256xf32>
    %194 = arith.addf %190, %193 : vector<2x256xf32>
    %c72 = arith.constant 72 : index
    %195 = memref.load %arg2[%c72] : memref<128xf32, #tpu.memory_space<smem>>
    %196 = vector.broadcast %195 : f32 to vector<2x256xf32>
    %197 = arith.mulf %2, %196 : vector<2x256xf32>
    %198 = arith.addf %194, %197 : vector<2x256xf32>
    %c104 = arith.constant 104 : index
    %199 = memref.load %arg2[%c104] : memref<128xf32, #tpu.memory_space<smem>>
    %200 = vector.broadcast %199 : f32 to vector<2x256xf32>
    %201 = arith.mulf %3, %200 : vector<2x256xf32>
    %202 = arith.addf %198, %201 : vector<2x256xf32>
    %c8_44 = arith.constant 8 : index
    %203 = memref.load %arg3[%c8_44] : memref<32xf32, #tpu.memory_space<smem>>
    %204 = vector.broadcast %203 : f32 to vector<2x256xf32>
    %205 = arith.addf %202, %204 : vector<2x256xf32>
    %cst_45 = arith.constant 0.000000e+00 : f32
    %206 = vector.broadcast %cst_45 : f32 to vector<2x256xf32>
    %207 = arith.maximumf %205, %206 : vector<2x256xf32>
    %cst_46 = arith.constant dense<0.000000e+00> : vector<2xf32>
    %208 = vector.multi_reduction <add>, %207, %cst_46 [1] : vector<2x256xf32> to vector<2xf32>
    %209 = vector.shape_cast %208 : vector<2xf32> to vector<2x1xf32>
    %c0_47 = arith.constant 0 : index
    %c8_48 = arith.constant 8 : index
    %210 = vector.load %arg9[%c0_47, %c8_48] : memref<2x32xf32, #tpu.memory_space<vmem>>, vector<2x1xf32>
    tpu.vector_store %arg9[%c0_47, %c8_48], %209 {strides = array<i32>} : memref<2x32xf32, #tpu.memory_space<vmem>>, vector<2x1xf32>,
    %c9 = arith.constant 9 : index
    %211 = memref.load %arg2[%c9] : memref<128xf32, #tpu.memory_space<smem>>
    %212 = vector.broadcast %211 : f32 to vector<2x256xf32>
    %213 = arith.mulf %0, %212 : vector<2x256xf32>
    %c41 = arith.constant 41 : index
    %214 = memref.load %arg2[%c41] : memref<128xf32, #tpu.memory_space<smem>>
    %215 = vector.broadcast %214 : f32 to vector<2x256xf32>
    %216 = arith.mulf %1, %215 : vector<2x256xf32>
    %217 = arith.addf %213, %216 : vector<2x256xf32>
    %c73 = arith.constant 73 : index
    %218 = memref.load %arg2[%c73] : memref<128xf32, #tpu.memory_space<smem>>
    %219 = vector.broadcast %218 : f32 to vector<2x256xf32>
    %220 = arith.mulf %2, %219 : vector<2x256xf32>
    %221 = arith.addf %217, %220 : vector<2x256xf32>
    %c105 = arith.constant 105 : index
    %222 = memref.load %arg2[%c105] : memref<128xf32, #tpu.memory_space<smem>>
    %223 = vector.broadcast %222 : f32 to vector<2x256xf32>
    %224 = arith.mulf %3, %223 : vector<2x256xf32>
    %225 = arith.addf %221, %224 : vector<2x256xf32>
    %c9_49 = arith.constant 9 : index
    %226 = memref.load %arg3[%c9_49] : memref<32xf32, #tpu.memory_space<smem>>
    %227 = vector.broadcast %226 : f32 to vector<2x256xf32>
    %228 = arith.addf %225, %227 : vector<2x256xf32>
    %cst_50 = arith.constant 0.000000e+00 : f32
    %229 = vector.broadcast %cst_50 : f32 to vector<2x256xf32>
    %230 = arith.maximumf %228, %229 : vector<2x256xf32>
    %cst_51 = arith.constant dense<0.000000e+00> : vector<2xf32>
    %231 = vector.multi_reduction <add>, %230, %cst_51 [1] : vector<2x256xf32> to vector<2xf32>
    %232 = vector.shape_cast %231 : vector<2xf32> to vector<2x1xf32>
    %c0_52 = arith.constant 0 : index
    %c9_53 = arith.constant 9 : index
    %233 = vector.load %arg9[%c0_52, %c9_53] : memref<2x32xf32, #tpu.memory_space<vmem>>, vector<2x1xf32>
    tpu.vector_store %arg9[%c0_52, %c9_53], %232 {strides = array<i32>} : memref<2x32xf32, #tpu.memory_space<vmem>>, vector<2x1xf32>,
    %c10 = arith.constant 10 : index
    %234 = memref.load %arg2[%c10] : memref<128xf32, #tpu.memory_space<smem>>
    %235 = vector.broadcast %234 : f32 to vector<2x256xf32>
    %236 = arith.mulf %0, %235 : vector<2x256xf32>
    %c42 = arith.constant 42 : index
    %237 = memref.load %arg2[%c42] : memref<128xf32, #tpu.memory_space<smem>>
    %238 = vector.broadcast %237 : f32 to vector<2x256xf32>
    %239 = arith.mulf %1, %238 : vector<2x256xf32>
    %240 = arith.addf %236, %239 : vector<2x256xf32>
    %c74 = arith.constant 74 : index
    %241 = memref.load %arg2[%c74] : memref<128xf32, #tpu.memory_space<smem>>
    %242 = vector.broadcast %241 : f32 to vector<2x256xf32>
    %243 = arith.mulf %2, %242 : vector<2x256xf32>
    %244 = arith.addf %240, %243 : vector<2x256xf32>
    %c106 = arith.constant 106 : index
    %245 = memref.load %arg2[%c106] : memref<128xf32, #tpu.memory_space<smem>>
    %246 = vector.broadcast %245 : f32 to vector<2x256xf32>
    %247 = arith.mulf %3, %246 : vector<2x256xf32>
    %248 = arith.addf %244, %247 : vector<2x256xf32>
    %c10_54 = arith.constant 10 : index
    %249 = memref.load %arg3[%c10_54] : memref<32xf32, #tpu.memory_space<smem>>
    %250 = vector.broadcast %249 : f32 to vector<2x256xf32>
    %251 = arith.addf %248, %250 : vector<2x256xf32>
    %cst_55 = arith.constant 0.000000e+00 : f32
    %252 = vector.broadcast %cst_55 : f32 to vector<2x256xf32>
    %253 = arith.maximumf %251, %252 : vector<2x256xf32>
    %cst_56 = arith.constant dense<0.000000e+00> : vector<2xf32>
    %254 = vector.multi_reduction <add>, %253, %cst_56 [1] : vector<2x256xf32> to vector<2xf32>
    %255 = vector.shape_cast %254 : vector<2xf32> to vector<2x1xf32>
    %c0_57 = arith.constant 0 : index
    %c10_58 = arith.constant 10 : index
    %256 = vector.load %arg9[%c0_57, %c10_58] : memref<2x32xf32, #tpu.memory_space<vmem>>, vector<2x1xf32>
    tpu.vector_store %arg9[%c0_57, %c10_58], %255 {strides = array<i32>} : memref<2x32xf32, #tpu.memory_space<vmem>>, vector<2x1xf32>,
    %c11 = arith.constant 11 : index
    %257 = memref.load %arg2[%c11] : memref<128xf32, #tpu.memory_space<smem>>
    %258 = vector.broadcast %257 : f32 to vector<2x256xf32>
    %259 = arith.mulf %0, %258 : vector<2x256xf32>
    %c43 = arith.constant 43 : index
    %260 = memref.load %arg2[%c43] : memref<128xf32, #tpu.memory_space<smem>>
    %261 = vector.broadcast %260 : f32 to vector<2x256xf32>
    %262 = arith.mulf %1, %261 : vector<2x256xf32>
    %263 = arith.addf %259, %262 : vector<2x256xf32>
    %c75 = arith.constant 75 : index
    %264 = memref.load %arg2[%c75] : memref<128xf32, #tpu.memory_space<smem>>
    %265 = vector.broadcast %264 : f32 to vector<2x256xf32>
    %266 = arith.mulf %2, %265 : vector<2x256xf32>
    %267 = arith.addf %263, %266 : vector<2x256xf32>
    %c107 = arith.constant 107 : index
    %268 = memref.load %arg2[%c107] : memref<128xf32, #tpu.memory_space<smem>>
    %269 = vector.broadcast %268 : f32 to vector<2x256xf32>
    %270 = arith.mulf %3, %269 : vector<2x256xf32>
    %271 = arith.addf %267, %270 : vector<2x256xf32>
    %c11_59 = arith.constant 11 : index
    %272 = memref.load %arg3[%c11_59] : memref<32xf32, #tpu.memory_space<smem>>
    %273 = vector.broadcast %272 : f32 to vector<2x256xf32>
    %274 = arith.addf %271, %273 : vector<2x256xf32>
    %cst_60 = arith.constant 0.000000e+00 : f32
    %275 = vector.broadcast %cst_60 : f32 to vector<2x256xf32>
    %276 = arith.maximumf %274, %275 : vector<2x256xf32>
    %cst_61 = arith.constant dense<0.000000e+00> : vector<2xf32>
    %277 = vector.multi_reduction <add>, %276, %cst_61 [1] : vector<2x256xf32> to vector<2xf32>
    %278 = vector.shape_cast %277 : vector<2xf32> to vector<2x1xf32>
    %c0_62 = arith.constant 0 : index
    %c11_63 = arith.constant 11 : index
    %279 = vector.load %arg9[%c0_62, %c11_63] : memref<2x32xf32, #tpu.memory_space<vmem>>, vector<2x1xf32>
    tpu.vector_store %arg9[%c0_62, %c11_63], %278 {strides = array<i32>} : memref<2x32xf32, #tpu.memory_space<vmem>>, vector<2x1xf32>,
    %c12 = arith.constant 12 : index
    %280 = memref.load %arg2[%c12] : memref<128xf32, #tpu.memory_space<smem>>
    %281 = vector.broadcast %280 : f32 to vector<2x256xf32>
    %282 = arith.mulf %0, %281 : vector<2x256xf32>
    %c44 = arith.constant 44 : index
    %283 = memref.load %arg2[%c44] : memref<128xf32, #tpu.memory_space<smem>>
    %284 = vector.broadcast %283 : f32 to vector<2x256xf32>
    %285 = arith.mulf %1, %284 : vector<2x256xf32>
    %286 = arith.addf %282, %285 : vector<2x256xf32>
    %c76 = arith.constant 76 : index
    %287 = memref.load %arg2[%c76] : memref<128xf32, #tpu.memory_space<smem>>
    %288 = vector.broadcast %287 : f32 to vector<2x256xf32>
    %289 = arith.mulf %2, %288 : vector<2x256xf32>
    %290 = arith.addf %286, %289 : vector<2x256xf32>
    %c108 = arith.constant 108 : index
    %291 = memref.load %arg2[%c108] : memref<128xf32, #tpu.memory_space<smem>>
    %292 = vector.broadcast %291 : f32 to vector<2x256xf32>
    %293 = arith.mulf %3, %292 : vector<2x256xf32>
    %294 = arith.addf %290, %293 : vector<2x256xf32>
    %c12_64 = arith.constant 12 : index
    %295 = memref.load %arg3[%c12_64] : memref<32xf32, #tpu.memory_space<smem>>
    %296 = vector.broadcast %295 : f32 to vector<2x256xf32>
    %297 = arith.addf %294, %296 : vector<2x256xf32>
    %cst_65 = arith.constant 0.000000e+00 : f32
    %298 = vector.broadcast %cst_65 : f32 to vector<2x256xf32>
    %299 = arith.maximumf %297, %298 : vector<2x256xf32>
    %cst_66 = arith.constant dense<0.000000e+00> : vector<2xf32>
    %300 = vector.multi_reduction <add>, %299, %cst_66 [1] : vector<2x256xf32> to vector<2xf32>
    %301 = vector.shape_cast %300 : vector<2xf32> to vector<2x1xf32>
    %c0_67 = arith.constant 0 : index
    %c12_68 = arith.constant 12 : index
    %302 = vector.load %arg9[%c0_67, %c12_68] : memref<2x32xf32, #tpu.memory_space<vmem>>, vector<2x1xf32>
    tpu.vector_store %arg9[%c0_67, %c12_68], %301 {strides = array<i32>} : memref<2x32xf32, #tpu.memory_space<vmem>>, vector<2x1xf32>,
    %c13 = arith.constant 13 : index
    %303 = memref.load %arg2[%c13] : memref<128xf32, #tpu.memory_space<smem>>
    %304 = vector.broadcast %303 : f32 to vector<2x256xf32>
    %305 = arith.mulf %0, %304 : vector<2x256xf32>
    %c45 = arith.constant 45 : index
    %306 = memref.load %arg2[%c45] : memref<128xf32, #tpu.memory_space<smem>>
    %307 = vector.broadcast %306 : f32 to vector<2x256xf32>
    %308 = arith.mulf %1, %307 : vector<2x256xf32>
    %309 = arith.addf %305, %308 : vector<2x256xf32>
    %c77 = arith.constant 77 : index
    %310 = memref.load %arg2[%c77] : memref<128xf32, #tpu.memory_space<smem>>
    %311 = vector.broadcast %310 : f32 to vector<2x256xf32>
    %312 = arith.mulf %2, %311 : vector<2x256xf32>
    %313 = arith.addf %309, %312 : vector<2x256xf32>
    %c109 = arith.constant 109 : index
    %314 = memref.load %arg2[%c109] : memref<128xf32, #tpu.memory_space<smem>>
    %315 = vector.broadcast %314 : f32 to vector<2x256xf32>
    %316 = arith.mulf %3, %315 : vector<2x256xf32>
    %317 = arith.addf %313, %316 : vector<2x256xf32>
    %c13_69 = arith.constant 13 : index
    %318 = memref.load %arg3[%c13_69] : memref<32xf32, #tpu.memory_space<smem>>
    %319 = vector.broadcast %318 : f32 to vector<2x256xf32>
    %320 = arith.addf %317, %319 : vector<2x256xf32>
    %cst_70 = arith.constant 0.000000e+00 : f32
    %321 = vector.broadcast %cst_70 : f32 to vector<2x256xf32>
    %322 = arith.maximumf %320, %321 : vector<2x256xf32>
    %cst_71 = arith.constant dense<0.000000e+00> : vector<2xf32>
    %323 = vector.multi_reduction <add>, %322, %cst_71 [1] : vector<2x256xf32> to vector<2xf32>
    %324 = vector.shape_cast %323 : vector<2xf32> to vector<2x1xf32>
    %c0_72 = arith.constant 0 : index
    %c13_73 = arith.constant 13 : index
    %325 = vector.load %arg9[%c0_72, %c13_73] : memref<2x32xf32, #tpu.memory_space<vmem>>, vector<2x1xf32>
    tpu.vector_store %arg9[%c0_72, %c13_73], %324 {strides = array<i32>} : memref<2x32xf32, #tpu.memory_space<vmem>>, vector<2x1xf32>,
    %c14 = arith.constant 14 : index
    %326 = memref.load %arg2[%c14] : memref<128xf32, #tpu.memory_space<smem>>
    %327 = vector.broadcast %326 : f32 to vector<2x256xf32>
    %328 = arith.mulf %0, %327 : vector<2x256xf32>
    %c46 = arith.constant 46 : index
    %329 = memref.load %arg2[%c46] : memref<128xf32, #tpu.memory_space<smem>>
    %330 = vector.broadcast %329 : f32 to vector<2x256xf32>
    %331 = arith.mulf %1, %330 : vector<2x256xf32>
    %332 = arith.addf %328, %331 : vector<2x256xf32>
    %c78 = arith.constant 78 : index
    %333 = memref.load %arg2[%c78] : memref<128xf32, #tpu.memory_space<smem>>
    %334 = vector.broadcast %333 : f32 to vector<2x256xf32>
    %335 = arith.mulf %2, %334 : vector<2x256xf32>
    %336 = arith.addf %332, %335 : vector<2x256xf32>
    %c110 = arith.constant 110 : index
    %337 = memref.load %arg2[%c110] : memref<128xf32, #tpu.memory_space<smem>>
    %338 = vector.broadcast %337 : f32 to vector<2x256xf32>
    %339 = arith.mulf %3, %338 : vector<2x256xf32>
    %340 = arith.addf %336, %339 : vector<2x256xf32>
    %c14_74 = arith.constant 14 : index
    %341 = memref.load %arg3[%c14_74] : memref<32xf32, #tpu.memory_space<smem>>
    %342 = vector.broadcast %341 : f32 to vector<2x256xf32>
    %343 = arith.addf %340, %342 : vector<2x256xf32>
    %cst_75 = arith.constant 0.000000e+00 : f32
    %344 = vector.broadcast %cst_75 : f32 to vector<2x256xf32>
    %345 = arith.maximumf %343, %344 : vector<2x256xf32>
    %cst_76 = arith.constant dense<0.000000e+00> : vector<2xf32>
    %346 = vector.multi_reduction <add>, %345, %cst_76 [1] : vector<2x256xf32> to vector<2xf32>
    %347 = vector.shape_cast %346 : vector<2xf32> to vector<2x1xf32>
    %c0_77 = arith.constant 0 : index
    %c14_78 = arith.constant 14 : index
    %348 = vector.load %arg9[%c0_77, %c14_78] : memref<2x32xf32, #tpu.memory_space<vmem>>, vector<2x1xf32>
    tpu.vector_store %arg9[%c0_77, %c14_78], %347 {strides = array<i32>} : memref<2x32xf32, #tpu.memory_space<vmem>>, vector<2x1xf32>,
    %c15 = arith.constant 15 : index
    %349 = memref.load %arg2[%c15] : memref<128xf32, #tpu.memory_space<smem>>
    %350 = vector.broadcast %349 : f32 to vector<2x256xf32>
    %351 = arith.mulf %0, %350 : vector<2x256xf32>
    %c47 = arith.constant 47 : index
    %352 = memref.load %arg2[%c47] : memref<128xf32, #tpu.memory_space<smem>>
    %353 = vector.broadcast %352 : f32 to vector<2x256xf32>
    %354 = arith.mulf %1, %353 : vector<2x256xf32>
    %355 = arith.addf %351, %354 : vector<2x256xf32>
    %c79 = arith.constant 79 : index
    %356 = memref.load %arg2[%c79] : memref<128xf32, #tpu.memory_space<smem>>
    %357 = vector.broadcast %356 : f32 to vector<2x256xf32>
    %358 = arith.mulf %2, %357 : vector<2x256xf32>
    %359 = arith.addf %355, %358 : vector<2x256xf32>
    %c111 = arith.constant 111 : index
    %360 = memref.load %arg2[%c111] : memref<128xf32, #tpu.memory_space<smem>>
    %361 = vector.broadcast %360 : f32 to vector<2x256xf32>
    %362 = arith.mulf %3, %361 : vector<2x256xf32>
    %363 = arith.addf %359, %362 : vector<2x256xf32>
    %c15_79 = arith.constant 15 : index
    %364 = memref.load %arg3[%c15_79] : memref<32xf32, #tpu.memory_space<smem>>
    %365 = vector.broadcast %364 : f32 to vector<2x256xf32>
    %366 = arith.addf %363, %365 : vector<2x256xf32>
    %cst_80 = arith.constant 0.000000e+00 : f32
    %367 = vector.broadcast %cst_80 : f32 to vector<2x256xf32>
    %368 = arith.maximumf %366, %367 : vector<2x256xf32>
    %cst_81 = arith.constant dense<0.000000e+00> : vector<2xf32>
    %369 = vector.multi_reduction <add>, %368, %cst_81 [1] : vector<2x256xf32> to vector<2xf32>
    %370 = vector.shape_cast %369 : vector<2xf32> to vector<2x1xf32>
    %c0_82 = arith.constant 0 : index
    %c15_83 = arith.constant 15 : index
    %371 = vector.load %arg9[%c0_82, %c15_83] : memref<2x32xf32, #tpu.memory_space<vmem>>, vector<2x1xf32>
    tpu.vector_store %arg9[%c0_82, %c15_83], %370 {strides = array<i32>} : memref<2x32xf32, #tpu.memory_space<vmem>>, vector<2x1xf32>,
    %c16 = arith.constant 16 : index
    %372 = memref.load %arg2[%c16] : memref<128xf32, #tpu.memory_space<smem>>
    %373 = vector.broadcast %372 : f32 to vector<2x256xf32>
    %374 = arith.mulf %0, %373 : vector<2x256xf32>
    %c48 = arith.constant 48 : index
    %375 = memref.load %arg2[%c48] : memref<128xf32, #tpu.memory_space<smem>>
    %376 = vector.broadcast %375 : f32 to vector<2x256xf32>
    %377 = arith.mulf %1, %376 : vector<2x256xf32>
    %378 = arith.addf %374, %377 : vector<2x256xf32>
    %c80 = arith.constant 80 : index
    %379 = memref.load %arg2[%c80] : memref<128xf32, #tpu.memory_space<smem>>
    %380 = vector.broadcast %379 : f32 to vector<2x256xf32>
    %381 = arith.mulf %2, %380 : vector<2x256xf32>
    %382 = arith.addf %378, %381 : vector<2x256xf32>
    %c112 = arith.constant 112 : index
    %383 = memref.load %arg2[%c112] : memref<128xf32, #tpu.memory_space<smem>>
    %384 = vector.broadcast %383 : f32 to vector<2x256xf32>
    %385 = arith.mulf %3, %384 : vector<2x256xf32>
    %386 = arith.addf %382, %385 : vector<2x256xf32>
    %c16_84 = arith.constant 16 : index
    %387 = memref.load %arg3[%c16_84] : memref<32xf32, #tpu.memory_space<smem>>
    %388 = vector.broadcast %387 : f32 to vector<2x256xf32>
    %389 = arith.addf %386, %388 : vector<2x256xf32>
    %cst_85 = arith.constant 0.000000e+00 : f32
    %390 = vector.broadcast %cst_85 : f32 to vector<2x256xf32>
    %391 = arith.maximumf %389, %390 : vector<2x256xf32>
    %cst_86 = arith.constant dense<0.000000e+00> : vector<2xf32>
    %392 = vector.multi_reduction <add>, %391, %cst_86 [1] : vector<2x256xf32> to vector<2xf32>
    %393 = vector.shape_cast %392 : vector<2xf32> to vector<2x1xf32>
    %c0_87 = arith.constant 0 : index
    %c16_88 = arith.constant 16 : index
    %394 = vector.load %arg9[%c0_87, %c16_88] : memref<2x32xf32, #tpu.memory_space<vmem>>, vector<2x1xf32>
    tpu.vector_store %arg9[%c0_87, %c16_88], %393 {strides = array<i32>} : memref<2x32xf32, #tpu.memory_space<vmem>>, vector<2x1xf32>,
    %c17 = arith.constant 17 : index
    %395 = memref.load %arg2[%c17] : memref<128xf32, #tpu.memory_space<smem>>
    %396 = vector.broadcast %395 : f32 to vector<2x256xf32>
    %397 = arith.mulf %0, %396 : vector<2x256xf32>
    %c49 = arith.constant 49 : index
    %398 = memref.load %arg2[%c49] : memref<128xf32, #tpu.memory_space<smem>>
    %399 = vector.broadcast %398 : f32 to vector<2x256xf32>
    %400 = arith.mulf %1, %399 : vector<2x256xf32>
    %401 = arith.addf %397, %400 : vector<2x256xf32>
    %c81 = arith.constant 81 : index
    %402 = memref.load %arg2[%c81] : memref<128xf32, #tpu.memory_space<smem>>
    %403 = vector.broadcast %402 : f32 to vector<2x256xf32>
    %404 = arith.mulf %2, %403 : vector<2x256xf32>
    %405 = arith.addf %401, %404 : vector<2x256xf32>
    %c113 = arith.constant 113 : index
    %406 = memref.load %arg2[%c113] : memref<128xf32, #tpu.memory_space<smem>>
    %407 = vector.broadcast %406 : f32 to vector<2x256xf32>
    %408 = arith.mulf %3, %407 : vector<2x256xf32>
    %409 = arith.addf %405, %408 : vector<2x256xf32>
    %c17_89 = arith.constant 17 : index
    %410 = memref.load %arg3[%c17_89] : memref<32xf32, #tpu.memory_space<smem>>
    %411 = vector.broadcast %410 : f32 to vector<2x256xf32>
    %412 = arith.addf %409, %411 : vector<2x256xf32>
    %cst_90 = arith.constant 0.000000e+00 : f32
    %413 = vector.broadcast %cst_90 : f32 to vector<2x256xf32>
    %414 = arith.maximumf %412, %413 : vector<2x256xf32>
    %cst_91 = arith.constant dense<0.000000e+00> : vector<2xf32>
    %415 = vector.multi_reduction <add>, %414, %cst_91 [1] : vector<2x256xf32> to vector<2xf32>
    %416 = vector.shape_cast %415 : vector<2xf32> to vector<2x1xf32>
    %c0_92 = arith.constant 0 : index
    %c17_93 = arith.constant 17 : index
    %417 = vector.load %arg9[%c0_92, %c17_93] : memref<2x32xf32, #tpu.memory_space<vmem>>, vector<2x1xf32>
    tpu.vector_store %arg9[%c0_92, %c17_93], %416 {strides = array<i32>} : memref<2x32xf32, #tpu.memory_space<vmem>>, vector<2x1xf32>,
    %c18 = arith.constant 18 : index
    %418 = memref.load %arg2[%c18] : memref<128xf32, #tpu.memory_space<smem>>
    %419 = vector.broadcast %418 : f32 to vector<2x256xf32>
    %420 = arith.mulf %0, %419 : vector<2x256xf32>
    %c50 = arith.constant 50 : index
    %421 = memref.load %arg2[%c50] : memref<128xf32, #tpu.memory_space<smem>>
    %422 = vector.broadcast %421 : f32 to vector<2x256xf32>
    %423 = arith.mulf %1, %422 : vector<2x256xf32>
    %424 = arith.addf %420, %423 : vector<2x256xf32>
    %c82 = arith.constant 82 : index
    %425 = memref.load %arg2[%c82] : memref<128xf32, #tpu.memory_space<smem>>
    %426 = vector.broadcast %425 : f32 to vector<2x256xf32>
    %427 = arith.mulf %2, %426 : vector<2x256xf32>
    %428 = arith.addf %424, %427 : vector<2x256xf32>
    %c114 = arith.constant 114 : index
    %429 = memref.load %arg2[%c114] : memref<128xf32, #tpu.memory_space<smem>>
    %430 = vector.broadcast %429 : f32 to vector<2x256xf32>
    %431 = arith.mulf %3, %430 : vector<2x256xf32>
    %432 = arith.addf %428, %431 : vector<2x256xf32>
    %c18_94 = arith.constant 18 : index
    %433 = memref.load %arg3[%c18_94] : memref<32xf32, #tpu.memory_space<smem>>
    %434 = vector.broadcast %433 : f32 to vector<2x256xf32>
    %435 = arith.addf %432, %434 : vector<2x256xf32>
    %cst_95 = arith.constant 0.000000e+00 : f32
    %436 = vector.broadcast %cst_95 : f32 to vector<2x256xf32>
    %437 = arith.maximumf %435, %436 : vector<2x256xf32>
    %cst_96 = arith.constant dense<0.000000e+00> : vector<2xf32>
    %438 = vector.multi_reduction <add>, %437, %cst_96 [1] : vector<2x256xf32> to vector<2xf32>
    %439 = vector.shape_cast %438 : vector<2xf32> to vector<2x1xf32>
    %c0_97 = arith.constant 0 : index
    %c18_98 = arith.constant 18 : index
    %440 = vector.load %arg9[%c0_97, %c18_98] : memref<2x32xf32, #tpu.memory_space<vmem>>, vector<2x1xf32>
    tpu.vector_store %arg9[%c0_97, %c18_98], %439 {strides = array<i32>} : memref<2x32xf32, #tpu.memory_space<vmem>>, vector<2x1xf32>,
    %c19 = arith.constant 19 : index
    %441 = memref.load %arg2[%c19] : memref<128xf32, #tpu.memory_space<smem>>
    %442 = vector.broadcast %441 : f32 to vector<2x256xf32>
    %443 = arith.mulf %0, %442 : vector<2x256xf32>
    %c51 = arith.constant 51 : index
    %444 = memref.load %arg2[%c51] : memref<128xf32, #tpu.memory_space<smem>>
    %445 = vector.broadcast %444 : f32 to vector<2x256xf32>
    %446 = arith.mulf %1, %445 : vector<2x256xf32>
    %447 = arith.addf %443, %446 : vector<2x256xf32>
    %c83 = arith.constant 83 : index
    %448 = memref.load %arg2[%c83] : memref<128xf32, #tpu.memory_space<smem>>
    %449 = vector.broadcast %448 : f32 to vector<2x256xf32>
    %450 = arith.mulf %2, %449 : vector<2x256xf32>
    %451 = arith.addf %447, %450 : vector<2x256xf32>
    %c115 = arith.constant 115 : index
    %452 = memref.load %arg2[%c115] : memref<128xf32, #tpu.memory_space<smem>>
    %453 = vector.broadcast %452 : f32 to vector<2x256xf32>
    %454 = arith.mulf %3, %453 : vector<2x256xf32>
    %455 = arith.addf %451, %454 : vector<2x256xf32>
    %c19_99 = arith.constant 19 : index
    %456 = memref.load %arg3[%c19_99] : memref<32xf32, #tpu.memory_space<smem>>
    %457 = vector.broadcast %456 : f32 to vector<2x256xf32>
    %458 = arith.addf %455, %457 : vector<2x256xf32>
    %cst_100 = arith.constant 0.000000e+00 : f32
    %459 = vector.broadcast %cst_100 : f32 to vector<2x256xf32>
    %460 = arith.maximumf %458, %459 : vector<2x256xf32>
    %cst_101 = arith.constant dense<0.000000e+00> : vector<2xf32>
    %461 = vector.multi_reduction <add>, %460, %cst_101 [1] : vector<2x256xf32> to vector<2xf32>
    %462 = vector.shape_cast %461 : vector<2xf32> to vector<2x1xf32>
    %c0_102 = arith.constant 0 : index
    %c19_103 = arith.constant 19 : index
    %463 = vector.load %arg9[%c0_102, %c19_103] : memref<2x32xf32, #tpu.memory_space<vmem>>, vector<2x1xf32>
    tpu.vector_store %arg9[%c0_102, %c19_103], %462 {strides = array<i32>} : memref<2x32xf32, #tpu.memory_space<vmem>>, vector<2x1xf32>,
    %c20 = arith.constant 20 : index
    %464 = memref.load %arg2[%c20] : memref<128xf32, #tpu.memory_space<smem>>
    %465 = vector.broadcast %464 : f32 to vector<2x256xf32>
    %466 = arith.mulf %0, %465 : vector<2x256xf32>
    %c52 = arith.constant 52 : index
    %467 = memref.load %arg2[%c52] : memref<128xf32, #tpu.memory_space<smem>>
    %468 = vector.broadcast %467 : f32 to vector<2x256xf32>
    %469 = arith.mulf %1, %468 : vector<2x256xf32>
    %470 = arith.addf %466, %469 : vector<2x256xf32>
    %c84 = arith.constant 84 : index
    %471 = memref.load %arg2[%c84] : memref<128xf32, #tpu.memory_space<smem>>
    %472 = vector.broadcast %471 : f32 to vector<2x256xf32>
    %473 = arith.mulf %2, %472 : vector<2x256xf32>
    %474 = arith.addf %470, %473 : vector<2x256xf32>
    %c116 = arith.constant 116 : index
    %475 = memref.load %arg2[%c116] : memref<128xf32, #tpu.memory_space<smem>>
    %476 = vector.broadcast %475 : f32 to vector<2x256xf32>
    %477 = arith.mulf %3, %476 : vector<2x256xf32>
    %478 = arith.addf %474, %477 : vector<2x256xf32>
    %c20_104 = arith.constant 20 : index
    %479 = memref.load %arg3[%c20_104] : memref<32xf32, #tpu.memory_space<smem>>
    %480 = vector.broadcast %479 : f32 to vector<2x256xf32>
    %481 = arith.addf %478, %480 : vector<2x256xf32>
    %cst_105 = arith.constant 0.000000e+00 : f32
    %482 = vector.broadcast %cst_105 : f32 to vector<2x256xf32>
    %483 = arith.maximumf %481, %482 : vector<2x256xf32>
    %cst_106 = arith.constant dense<0.000000e+00> : vector<2xf32>
    %484 = vector.multi_reduction <add>, %483, %cst_106 [1] : vector<2x256xf32> to vector<2xf32>
    %485 = vector.shape_cast %484 : vector<2xf32> to vector<2x1xf32>
    %c0_107 = arith.constant 0 : index
    %c20_108 = arith.constant 20 : index
    %486 = vector.load %arg9[%c0_107, %c20_108] : memref<2x32xf32, #tpu.memory_space<vmem>>, vector<2x1xf32>
    tpu.vector_store %arg9[%c0_107, %c20_108], %485 {strides = array<i32>} : memref<2x32xf32, #tpu.memory_space<vmem>>, vector<2x1xf32>,
    %c21 = arith.constant 21 : index
    %487 = memref.load %arg2[%c21] : memref<128xf32, #tpu.memory_space<smem>>
    %488 = vector.broadcast %487 : f32 to vector<2x256xf32>
    %489 = arith.mulf %0, %488 : vector<2x256xf32>
    %c53 = arith.constant 53 : index
    %490 = memref.load %arg2[%c53] : memref<128xf32, #tpu.memory_space<smem>>
    %491 = vector.broadcast %490 : f32 to vector<2x256xf32>
    %492 = arith.mulf %1, %491 : vector<2x256xf32>
    %493 = arith.addf %489, %492 : vector<2x256xf32>
    %c85 = arith.constant 85 : index
    %494 = memref.load %arg2[%c85] : memref<128xf32, #tpu.memory_space<smem>>
    %495 = vector.broadcast %494 : f32 to vector<2x256xf32>
    %496 = arith.mulf %2, %495 : vector<2x256xf32>
    %497 = arith.addf %493, %496 : vector<2x256xf32>
    %c117 = arith.constant 117 : index
    %498 = memref.load %arg2[%c117] : memref<128xf32, #tpu.memory_space<smem>>
    %499 = vector.broadcast %498 : f32 to vector<2x256xf32>
    %500 = arith.mulf %3, %499 : vector<2x256xf32>
    %501 = arith.addf %497, %500 : vector<2x256xf32>
    %c21_109 = arith.constant 21 : index
    %502 = memref.load %arg3[%c21_109] : memref<32xf32, #tpu.memory_space<smem>>
    %503 = vector.broadcast %502 : f32 to vector<2x256xf32>
    %504 = arith.addf %501, %503 : vector<2x256xf32>
    %cst_110 = arith.constant 0.000000e+00 : f32
    %505 = vector.broadcast %cst_110 : f32 to vector<2x256xf32>
    %506 = arith.maximumf %504, %505 : vector<2x256xf32>
    %cst_111 = arith.constant dense<0.000000e+00> : vector<2xf32>
    %507 = vector.multi_reduction <add>, %506, %cst_111 [1] : vector<2x256xf32> to vector<2xf32>
    %508 = vector.shape_cast %507 : vector<2xf32> to vector<2x1xf32>
    %c0_112 = arith.constant 0 : index
    %c21_113 = arith.constant 21 : index
    %509 = vector.load %arg9[%c0_112, %c21_113] : memref<2x32xf32, #tpu.memory_space<vmem>>, vector<2x1xf32>
    tpu.vector_store %arg9[%c0_112, %c21_113], %508 {strides = array<i32>} : memref<2x32xf32, #tpu.memory_space<vmem>>, vector<2x1xf32>,
    %c22 = arith.constant 22 : index
    %510 = memref.load %arg2[%c22] : memref<128xf32, #tpu.memory_space<smem>>
    %511 = vector.broadcast %510 : f32 to vector<2x256xf32>
    %512 = arith.mulf %0, %511 : vector<2x256xf32>
    %c54 = arith.constant 54 : index
    %513 = memref.load %arg2[%c54] : memref<128xf32, #tpu.memory_space<smem>>
    %514 = vector.broadcast %513 : f32 to vector<2x256xf32>
    %515 = arith.mulf %1, %514 : vector<2x256xf32>
    %516 = arith.addf %512, %515 : vector<2x256xf32>
    %c86 = arith.constant 86 : index
    %517 = memref.load %arg2[%c86] : memref<128xf32, #tpu.memory_space<smem>>
    %518 = vector.broadcast %517 : f32 to vector<2x256xf32>
    %519 = arith.mulf %2, %518 : vector<2x256xf32>
    %520 = arith.addf %516, %519 : vector<2x256xf32>
    %c118 = arith.constant 118 : index
    %521 = memref.load %arg2[%c118] : memref<128xf32, #tpu.memory_space<smem>>
    %522 = vector.broadcast %521 : f32 to vector<2x256xf32>
    %523 = arith.mulf %3, %522 : vector<2x256xf32>
    %524 = arith.addf %520, %523 : vector<2x256xf32>
    %c22_114 = arith.constant 22 : index
    %525 = memref.load %arg3[%c22_114] : memref<32xf32, #tpu.memory_space<smem>>
    %526 = vector.broadcast %525 : f32 to vector<2x256xf32>
    %527 = arith.addf %524, %526 : vector<2x256xf32>
    %cst_115 = arith.constant 0.000000e+00 : f32
    %528 = vector.broadcast %cst_115 : f32 to vector<2x256xf32>
    %529 = arith.maximumf %527, %528 : vector<2x256xf32>
    %cst_116 = arith.constant dense<0.000000e+00> : vector<2xf32>
    %530 = vector.multi_reduction <add>, %529, %cst_116 [1] : vector<2x256xf32> to vector<2xf32>
    %531 = vector.shape_cast %530 : vector<2xf32> to vector<2x1xf32>
    %c0_117 = arith.constant 0 : index
    %c22_118 = arith.constant 22 : index
    %532 = vector.load %arg9[%c0_117, %c22_118] : memref<2x32xf32, #tpu.memory_space<vmem>>, vector<2x1xf32>
    tpu.vector_store %arg9[%c0_117, %c22_118], %531 {strides = array<i32>} : memref<2x32xf32, #tpu.memory_space<vmem>>, vector<2x1xf32>,
    %c23 = arith.constant 23 : index
    %533 = memref.load %arg2[%c23] : memref<128xf32, #tpu.memory_space<smem>>
    %534 = vector.broadcast %533 : f32 to vector<2x256xf32>
    %535 = arith.mulf %0, %534 : vector<2x256xf32>
    %c55 = arith.constant 55 : index
    %536 = memref.load %arg2[%c55] : memref<128xf32, #tpu.memory_space<smem>>
    %537 = vector.broadcast %536 : f32 to vector<2x256xf32>
    %538 = arith.mulf %1, %537 : vector<2x256xf32>
    %539 = arith.addf %535, %538 : vector<2x256xf32>
    %c87 = arith.constant 87 : index
    %540 = memref.load %arg2[%c87] : memref<128xf32, #tpu.memory_space<smem>>
    %541 = vector.broadcast %540 : f32 to vector<2x256xf32>
    %542 = arith.mulf %2, %541 : vector<2x256xf32>
    %543 = arith.addf %539, %542 : vector<2x256xf32>
    %c119 = arith.constant 119 : index
    %544 = memref.load %arg2[%c119] : memref<128xf32, #tpu.memory_space<smem>>
    %545 = vector.broadcast %544 : f32 to vector<2x256xf32>
    %546 = arith.mulf %3, %545 : vector<2x256xf32>
    %547 = arith.addf %543, %546 : vector<2x256xf32>
    %c23_119 = arith.constant 23 : index
    %548 = memref.load %arg3[%c23_119] : memref<32xf32, #tpu.memory_space<smem>>
    %549 = vector.broadcast %548 : f32 to vector<2x256xf32>
    %550 = arith.addf %547, %549 : vector<2x256xf32>
    %cst_120 = arith.constant 0.000000e+00 : f32
    %551 = vector.broadcast %cst_120 : f32 to vector<2x256xf32>
    %552 = arith.maximumf %550, %551 : vector<2x256xf32>
    %cst_121 = arith.constant dense<0.000000e+00> : vector<2xf32>
    %553 = vector.multi_reduction <add>, %552, %cst_121 [1] : vector<2x256xf32> to vector<2xf32>
    %554 = vector.shape_cast %553 : vector<2xf32> to vector<2x1xf32>
    %c0_122 = arith.constant 0 : index
    %c23_123 = arith.constant 23 : index
    %555 = vector.load %arg9[%c0_122, %c23_123] : memref<2x32xf32, #tpu.memory_space<vmem>>, vector<2x1xf32>
    tpu.vector_store %arg9[%c0_122, %c23_123], %554 {strides = array<i32>} : memref<2x32xf32, #tpu.memory_space<vmem>>, vector<2x1xf32>,
    %c24 = arith.constant 24 : index
    %556 = memref.load %arg2[%c24] : memref<128xf32, #tpu.memory_space<smem>>
    %557 = vector.broadcast %556 : f32 to vector<2x256xf32>
    %558 = arith.mulf %0, %557 : vector<2x256xf32>
    %c56 = arith.constant 56 : index
    %559 = memref.load %arg2[%c56] : memref<128xf32, #tpu.memory_space<smem>>
    %560 = vector.broadcast %559 : f32 to vector<2x256xf32>
    %561 = arith.mulf %1, %560 : vector<2x256xf32>
    %562 = arith.addf %558, %561 : vector<2x256xf32>
    %c88 = arith.constant 88 : index
    %563 = memref.load %arg2[%c88] : memref<128xf32, #tpu.memory_space<smem>>
    %564 = vector.broadcast %563 : f32 to vector<2x256xf32>
    %565 = arith.mulf %2, %564 : vector<2x256xf32>
    %566 = arith.addf %562, %565 : vector<2x256xf32>
    %c120 = arith.constant 120 : index
    %567 = memref.load %arg2[%c120] : memref<128xf32, #tpu.memory_space<smem>>
    %568 = vector.broadcast %567 : f32 to vector<2x256xf32>
    %569 = arith.mulf %3, %568 : vector<2x256xf32>
    %570 = arith.addf %566, %569 : vector<2x256xf32>
    %c24_124 = arith.constant 24 : index
    %571 = memref.load %arg3[%c24_124] : memref<32xf32, #tpu.memory_space<smem>>
    %572 = vector.broadcast %571 : f32 to vector<2x256xf32>
    %573 = arith.addf %570, %572 : vector<2x256xf32>
    %cst_125 = arith.constant 0.000000e+00 : f32
    %574 = vector.broadcast %cst_125 : f32 to vector<2x256xf32>
    %575 = arith.maximumf %573, %574 : vector<2x256xf32>
    %cst_126 = arith.constant dense<0.000000e+00> : vector<2xf32>
    %576 = vector.multi_reduction <add>, %575, %cst_126 [1] : vector<2x256xf32> to vector<2xf32>
    %577 = vector.shape_cast %576 : vector<2xf32> to vector<2x1xf32>
    %c0_127 = arith.constant 0 : index
    %c24_128 = arith.constant 24 : index
    %578 = vector.load %arg9[%c0_127, %c24_128] : memref<2x32xf32, #tpu.memory_space<vmem>>, vector<2x1xf32>
    tpu.vector_store %arg9[%c0_127, %c24_128], %577 {strides = array<i32>} : memref<2x32xf32, #tpu.memory_space<vmem>>, vector<2x1xf32>,
    %c25 = arith.constant 25 : index
    %579 = memref.load %arg2[%c25] : memref<128xf32, #tpu.memory_space<smem>>
    %580 = vector.broadcast %579 : f32 to vector<2x256xf32>
    %581 = arith.mulf %0, %580 : vector<2x256xf32>
    %c57 = arith.constant 57 : index
    %582 = memref.load %arg2[%c57] : memref<128xf32, #tpu.memory_space<smem>>
    %583 = vector.broadcast %582 : f32 to vector<2x256xf32>
    %584 = arith.mulf %1, %583 : vector<2x256xf32>
    %585 = arith.addf %581, %584 : vector<2x256xf32>
    %c89 = arith.constant 89 : index
    %586 = memref.load %arg2[%c89] : memref<128xf32, #tpu.memory_space<smem>>
    %587 = vector.broadcast %586 : f32 to vector<2x256xf32>
    %588 = arith.mulf %2, %587 : vector<2x256xf32>
    %589 = arith.addf %585, %588 : vector<2x256xf32>
    %c121 = arith.constant 121 : index
    %590 = memref.load %arg2[%c121] : memref<128xf32, #tpu.memory_space<smem>>
    %591 = vector.broadcast %590 : f32 to vector<2x256xf32>
    %592 = arith.mulf %3, %591 : vector<2x256xf32>
    %593 = arith.addf %589, %592 : vector<2x256xf32>
    %c25_129 = arith.constant 25 : index
    %594 = memref.load %arg3[%c25_129] : memref<32xf32, #tpu.memory_space<smem>>
    %595 = vector.broadcast %594 : f32 to vector<2x256xf32>
    %596 = arith.addf %593, %595 : vector<2x256xf32>
    %cst_130 = arith.constant 0.000000e+00 : f32
    %597 = vector.broadcast %cst_130 : f32 to vector<2x256xf32>
    %598 = arith.maximumf %596, %597 : vector<2x256xf32>
    %cst_131 = arith.constant dense<0.000000e+00> : vector<2xf32>
    %599 = vector.multi_reduction <add>, %598, %cst_131 [1] : vector<2x256xf32> to vector<2xf32>
    %600 = vector.shape_cast %599 : vector<2xf32> to vector<2x1xf32>
    %c0_132 = arith.constant 0 : index
    %c25_133 = arith.constant 25 : index
    %601 = vector.load %arg9[%c0_132, %c25_133] : memref<2x32xf32, #tpu.memory_space<vmem>>, vector<2x1xf32>
    tpu.vector_store %arg9[%c0_132, %c25_133], %600 {strides = array<i32>} : memref<2x32xf32, #tpu.memory_space<vmem>>, vector<2x1xf32>,
    %c26 = arith.constant 26 : index
    %602 = memref.load %arg2[%c26] : memref<128xf32, #tpu.memory_space<smem>>
    %603 = vector.broadcast %602 : f32 to vector<2x256xf32>
    %604 = arith.mulf %0, %603 : vector<2x256xf32>
    %c58 = arith.constant 58 : index
    %605 = memref.load %arg2[%c58] : memref<128xf32, #tpu.memory_space<smem>>
    %606 = vector.broadcast %605 : f32 to vector<2x256xf32>
    %607 = arith.mulf %1, %606 : vector<2x256xf32>
    %608 = arith.addf %604, %607 : vector<2x256xf32>
    %c90 = arith.constant 90 : index
    %609 = memref.load %arg2[%c90] : memref<128xf32, #tpu.memory_space<smem>>
    %610 = vector.broadcast %609 : f32 to vector<2x256xf32>
    %611 = arith.mulf %2, %610 : vector<2x256xf32>
    %612 = arith.addf %608, %611 : vector<2x256xf32>
    %c122 = arith.constant 122 : index
    %613 = memref.load %arg2[%c122] : memref<128xf32, #tpu.memory_space<smem>>
    %614 = vector.broadcast %613 : f32 to vector<2x256xf32>
    %615 = arith.mulf %3, %614 : vector<2x256xf32>
    %616 = arith.addf %612, %615 : vector<2x256xf32>
    %c26_134 = arith.constant 26 : index
    %617 = memref.load %arg3[%c26_134] : memref<32xf32, #tpu.memory_space<smem>>
    %618 = vector.broadcast %617 : f32 to vector<2x256xf32>
    %619 = arith.addf %616, %618 : vector<2x256xf32>
    %cst_135 = arith.constant 0.000000e+00 : f32
    %620 = vector.broadcast %cst_135 : f32 to vector<2x256xf32>
    %621 = arith.maximumf %619, %620 : vector<2x256xf32>
    %cst_136 = arith.constant dense<0.000000e+00> : vector<2xf32>
    %622 = vector.multi_reduction <add>, %621, %cst_136 [1] : vector<2x256xf32> to vector<2xf32>
    %623 = vector.shape_cast %622 : vector<2xf32> to vector<2x1xf32>
    %c0_137 = arith.constant 0 : index
    %c26_138 = arith.constant 26 : index
    %624 = vector.load %arg9[%c0_137, %c26_138] : memref<2x32xf32, #tpu.memory_space<vmem>>, vector<2x1xf32>
    tpu.vector_store %arg9[%c0_137, %c26_138], %623 {strides = array<i32>} : memref<2x32xf32, #tpu.memory_space<vmem>>, vector<2x1xf32>,
    %c27 = arith.constant 27 : index
    %625 = memref.load %arg2[%c27] : memref<128xf32, #tpu.memory_space<smem>>
    %626 = vector.broadcast %625 : f32 to vector<2x256xf32>
    %627 = arith.mulf %0, %626 : vector<2x256xf32>
    %c59 = arith.constant 59 : index
    %628 = memref.load %arg2[%c59] : memref<128xf32, #tpu.memory_space<smem>>
    %629 = vector.broadcast %628 : f32 to vector<2x256xf32>
    %630 = arith.mulf %1, %629 : vector<2x256xf32>
    %631 = arith.addf %627, %630 : vector<2x256xf32>
    %c91 = arith.constant 91 : index
    %632 = memref.load %arg2[%c91] : memref<128xf32, #tpu.memory_space<smem>>
    %633 = vector.broadcast %632 : f32 to vector<2x256xf32>
    %634 = arith.mulf %2, %633 : vector<2x256xf32>
    %635 = arith.addf %631, %634 : vector<2x256xf32>
    %c123 = arith.constant 123 : index
    %636 = memref.load %arg2[%c123] : memref<128xf32, #tpu.memory_space<smem>>
    %637 = vector.broadcast %636 : f32 to vector<2x256xf32>
    %638 = arith.mulf %3, %637 : vector<2x256xf32>
    %639 = arith.addf %635, %638 : vector<2x256xf32>
    %c27_139 = arith.constant 27 : index
    %640 = memref.load %arg3[%c27_139] : memref<32xf32, #tpu.memory_space<smem>>
    %641 = vector.broadcast %640 : f32 to vector<2x256xf32>
    %642 = arith.addf %639, %641 : vector<2x256xf32>
    %cst_140 = arith.constant 0.000000e+00 : f32
    %643 = vector.broadcast %cst_140 : f32 to vector<2x256xf32>
    %644 = arith.maximumf %642, %643 : vector<2x256xf32>
    %cst_141 = arith.constant dense<0.000000e+00> : vector<2xf32>
    %645 = vector.multi_reduction <add>, %644, %cst_141 [1] : vector<2x256xf32> to vector<2xf32>
    %646 = vector.shape_cast %645 : vector<2xf32> to vector<2x1xf32>
    %c0_142 = arith.constant 0 : index
    %c27_143 = arith.constant 27 : index
    %647 = vector.load %arg9[%c0_142, %c27_143] : memref<2x32xf32, #tpu.memory_space<vmem>>, vector<2x1xf32>
    tpu.vector_store %arg9[%c0_142, %c27_143], %646 {strides = array<i32>} : memref<2x32xf32, #tpu.memory_space<vmem>>, vector<2x1xf32>,
    %c28 = arith.constant 28 : index
    %648 = memref.load %arg2[%c28] : memref<128xf32, #tpu.memory_space<smem>>
    %649 = vector.broadcast %648 : f32 to vector<2x256xf32>
    %650 = arith.mulf %0, %649 : vector<2x256xf32>
    %c60 = arith.constant 60 : index
    %651 = memref.load %arg2[%c60] : memref<128xf32, #tpu.memory_space<smem>>
    %652 = vector.broadcast %651 : f32 to vector<2x256xf32>
    %653 = arith.mulf %1, %652 : vector<2x256xf32>
    %654 = arith.addf %650, %653 : vector<2x256xf32>
    %c92 = arith.constant 92 : index
    %655 = memref.load %arg2[%c92] : memref<128xf32, #tpu.memory_space<smem>>
    %656 = vector.broadcast %655 : f32 to vector<2x256xf32>
    %657 = arith.mulf %2, %656 : vector<2x256xf32>
    %658 = arith.addf %654, %657 : vector<2x256xf32>
    %c124 = arith.constant 124 : index
    %659 = memref.load %arg2[%c124] : memref<128xf32, #tpu.memory_space<smem>>
    %660 = vector.broadcast %659 : f32 to vector<2x256xf32>
    %661 = arith.mulf %3, %660 : vector<2x256xf32>
    %662 = arith.addf %658, %661 : vector<2x256xf32>
    %c28_144 = arith.constant 28 : index
    %663 = memref.load %arg3[%c28_144] : memref<32xf32, #tpu.memory_space<smem>>
    %664 = vector.broadcast %663 : f32 to vector<2x256xf32>
    %665 = arith.addf %662, %664 : vector<2x256xf32>
    %cst_145 = arith.constant 0.000000e+00 : f32
    %666 = vector.broadcast %cst_145 : f32 to vector<2x256xf32>
    %667 = arith.maximumf %665, %666 : vector<2x256xf32>
    %cst_146 = arith.constant dense<0.000000e+00> : vector<2xf32>
    %668 = vector.multi_reduction <add>, %667, %cst_146 [1] : vector<2x256xf32> to vector<2xf32>
    %669 = vector.shape_cast %668 : vector<2xf32> to vector<2x1xf32>
    %c0_147 = arith.constant 0 : index
    %c28_148 = arith.constant 28 : index
    %670 = vector.load %arg9[%c0_147, %c28_148] : memref<2x32xf32, #tpu.memory_space<vmem>>, vector<2x1xf32>
    tpu.vector_store %arg9[%c0_147, %c28_148], %669 {strides = array<i32>} : memref<2x32xf32, #tpu.memory_space<vmem>>, vector<2x1xf32>,
    %c29 = arith.constant 29 : index
    %671 = memref.load %arg2[%c29] : memref<128xf32, #tpu.memory_space<smem>>
    %672 = vector.broadcast %671 : f32 to vector<2x256xf32>
    %673 = arith.mulf %0, %672 : vector<2x256xf32>
    %c61 = arith.constant 61 : index
    %674 = memref.load %arg2[%c61] : memref<128xf32, #tpu.memory_space<smem>>
    %675 = vector.broadcast %674 : f32 to vector<2x256xf32>
    %676 = arith.mulf %1, %675 : vector<2x256xf32>
    %677 = arith.addf %673, %676 : vector<2x256xf32>
    %c93 = arith.constant 93 : index
    %678 = memref.load %arg2[%c93] : memref<128xf32, #tpu.memory_space<smem>>
    %679 = vector.broadcast %678 : f32 to vector<2x256xf32>
    %680 = arith.mulf %2, %679 : vector<2x256xf32>
    %681 = arith.addf %677, %680 : vector<2x256xf32>
    %c125 = arith.constant 125 : index
    %682 = memref.load %arg2[%c125] : memref<128xf32, #tpu.memory_space<smem>>
    %683 = vector.broadcast %682 : f32 to vector<2x256xf32>
    %684 = arith.mulf %3, %683 : vector<2x256xf32>
    %685 = arith.addf %681, %684 : vector<2x256xf32>
    %c29_149 = arith.constant 29 : index
    %686 = memref.load %arg3[%c29_149] : memref<32xf32, #tpu.memory_space<smem>>
    %687 = vector.broadcast %686 : f32 to vector<2x256xf32>
    %688 = arith.addf %685, %687 : vector<2x256xf32>
    %cst_150 = arith.constant 0.000000e+00 : f32
    %689 = vector.broadcast %cst_150 : f32 to vector<2x256xf32>
    %690 = arith.maximumf %688, %689 : vector<2x256xf32>
    %cst_151 = arith.constant dense<0.000000e+00> : vector<2xf32>
    %691 = vector.multi_reduction <add>, %690, %cst_151 [1] : vector<2x256xf32> to vector<2xf32>
    %692 = vector.shape_cast %691 : vector<2xf32> to vector<2x1xf32>
    %c0_152 = arith.constant 0 : index
    %c29_153 = arith.constant 29 : index
    %693 = vector.load %arg9[%c0_152, %c29_153] : memref<2x32xf32, #tpu.memory_space<vmem>>, vector<2x1xf32>
    tpu.vector_store %arg9[%c0_152, %c29_153], %692 {strides = array<i32>} : memref<2x32xf32, #tpu.memory_space<vmem>>, vector<2x1xf32>,
    %c30 = arith.constant 30 : index
    %694 = memref.load %arg2[%c30] : memref<128xf32, #tpu.memory_space<smem>>
    %695 = vector.broadcast %694 : f32 to vector<2x256xf32>
    %696 = arith.mulf %0, %695 : vector<2x256xf32>
    %c62 = arith.constant 62 : index
    %697 = memref.load %arg2[%c62] : memref<128xf32, #tpu.memory_space<smem>>
    %698 = vector.broadcast %697 : f32 to vector<2x256xf32>
    %699 = arith.mulf %1, %698 : vector<2x256xf32>
    %700 = arith.addf %696, %699 : vector<2x256xf32>
    %c94 = arith.constant 94 : index
    %701 = memref.load %arg2[%c94] : memref<128xf32, #tpu.memory_space<smem>>
    %702 = vector.broadcast %701 : f32 to vector<2x256xf32>
    %703 = arith.mulf %2, %702 : vector<2x256xf32>
    %704 = arith.addf %700, %703 : vector<2x256xf32>
    %c126 = arith.constant 126 : index
    %705 = memref.load %arg2[%c126] : memref<128xf32, #tpu.memory_space<smem>>
    %706 = vector.broadcast %705 : f32 to vector<2x256xf32>
    %707 = arith.mulf %3, %706 : vector<2x256xf32>
    %708 = arith.addf %704, %707 : vector<2x256xf32>
    %c30_154 = arith.constant 30 : index
    %709 = memref.load %arg3[%c30_154] : memref<32xf32, #tpu.memory_space<smem>>
    %710 = vector.broadcast %709 : f32 to vector<2x256xf32>
    %711 = arith.addf %708, %710 : vector<2x256xf32>
    %cst_155 = arith.constant 0.000000e+00 : f32
    %712 = vector.broadcast %cst_155 : f32 to vector<2x256xf32>
    %713 = arith.maximumf %711, %712 : vector<2x256xf32>
    %cst_156 = arith.constant dense<0.000000e+00> : vector<2xf32>
    %714 = vector.multi_reduction <add>, %713, %cst_156 [1] : vector<2x256xf32> to vector<2xf32>
    %715 = vector.shape_cast %714 : vector<2xf32> to vector<2x1xf32>
    %c0_157 = arith.constant 0 : index
    %c30_158 = arith.constant 30 : index
    %716 = vector.load %arg9[%c0_157, %c30_158] : memref<2x32xf32, #tpu.memory_space<vmem>>, vector<2x1xf32>
    tpu.vector_store %arg9[%c0_157, %c30_158], %715 {strides = array<i32>} : memref<2x32xf32, #tpu.memory_space<vmem>>, vector<2x1xf32>,
    %c31 = arith.constant 31 : index
    %717 = memref.load %arg2[%c31] : memref<128xf32, #tpu.memory_space<smem>>
    %718 = vector.broadcast %717 : f32 to vector<2x256xf32>
    %719 = arith.mulf %0, %718 : vector<2x256xf32>
    %c63 = arith.constant 63 : index
    %720 = memref.load %arg2[%c63] : memref<128xf32, #tpu.memory_space<smem>>
    %721 = vector.broadcast %720 : f32 to vector<2x256xf32>
    %722 = arith.mulf %1, %721 : vector<2x256xf32>
    %723 = arith.addf %719, %722 : vector<2x256xf32>
    %c95 = arith.constant 95 : index
    %724 = memref.load %arg2[%c95] : memref<128xf32, #tpu.memory_space<smem>>
    %725 = vector.broadcast %724 : f32 to vector<2x256xf32>
    %726 = arith.mulf %2, %725 : vector<2x256xf32>
    %727 = arith.addf %723, %726 : vector<2x256xf32>
    %c127 = arith.constant 127 : index
    %728 = memref.load %arg2[%c127] : memref<128xf32, #tpu.memory_space<smem>>
    %729 = vector.broadcast %728 : f32 to vector<2x256xf32>
    %730 = arith.mulf %3, %729 : vector<2x256xf32>
    %731 = arith.addf %727, %730 : vector<2x256xf32>
    %c31_159 = arith.constant 31 : index
    %732 = memref.load %arg3[%c31_159] : memref<32xf32, #tpu.memory_space<smem>>
    %733 = vector.broadcast %732 : f32 to vector<2x256xf32>
    %734 = arith.addf %731, %733 : vector<2x256xf32>
    %cst_160 = arith.constant 0.000000e+00 : f32
    %735 = vector.broadcast %cst_160 : f32 to vector<2x256xf32>
    %736 = arith.maximumf %734, %735 : vector<2x256xf32>
    %cst_161 = arith.constant dense<0.000000e+00> : vector<2xf32>
    %737 = vector.multi_reduction <add>, %736, %cst_161 [1] : vector<2x256xf32> to vector<2xf32>
    %738 = vector.shape_cast %737 : vector<2xf32> to vector<2x1xf32>
    %c0_162 = arith.constant 0 : index
    %c31_163 = arith.constant 31 : index
    %739 = vector.load %arg9[%c0_162, %c31_163] : memref<2x32xf32, #tpu.memory_space<vmem>>, vector<2x1xf32>
    tpu.vector_store %arg9[%c0_162, %c31_163], %738 {strides = array<i32>} : memref<2x32xf32, #tpu.memory_space<vmem>>, vector<2x1xf32>,
    %c0_164 = arith.constant 0 : index
    %c0_165 = arith.constant 0 : index
    %740 = vector.load %arg9[%c0_164, %c0_165] : memref<2x32xf32, #tpu.memory_space<vmem>>, vector<2x32xf32>
    %c0_166 = arith.constant 0 : index
    %c0_167 = arith.constant 0 : index
    %741 = vector.load %arg4[%c0_166, %c0_167] : memref<32x16xf32, #tpu.memory_space<vmem>>, vector<32x16xf32>
    %cst_168 = arith.constant dense<0.000000e+00> : vector<2x16xf32>
    %742 = tpu.matmul %740, %741, %cst_168 {dimension_numbers = #tpu.dot_dimension_numbers<[1], [0], [0], [1], [0, 0, 1, 1], [], []>} : vector<2x32xf32>, vector<32x16xf32>, vector<2x16xf32> -> vector<2x16xf32>
    %c0_169 = arith.constant 0 : index
    %c0_170 = arith.constant 0 : index
    %743 = vector.load %arg5[%c0_169, %c0_170] : memref<1x16xf32, #tpu.memory_space<vmem>>, vector<1x16xf32>
    %744 = vector.broadcast %743 : vector<1x16xf32> to vector<2x16xf32>
    %745 = arith.addf %742, %744 : vector<2x16xf32>
    %cst_171 = arith.constant 0.000000e+00 : f32
    %746 = vector.broadcast %cst_171 : f32 to vector<2x16xf32>
    %747 = arith.maximumf %745, %746 : vector<2x16xf32>
    %c0_172 = arith.constant 0 : index
    %c0_173 = arith.constant 0 : index
    %748 = vector.load %arg6[%c0_172, %c0_173] : memref<16x16xf32, #tpu.memory_space<vmem>>, vector<16x16xf32>
    %cst_174 = arith.constant dense<0.000000e+00> : vector<2x16xf32>
    %749 = tpu.matmul %747, %748, %cst_174 {dimension_numbers = #tpu.dot_dimension_numbers<[1], [0], [0], [1], [0, 0, 1, 1], [], []>} : vector<2x16xf32>, vector<16x16xf32>, vector<2x16xf32> -> vector<2x16xf32>
    %c0_175 = arith.constant 0 : index
    %c0_176 = arith.constant 0 : index
    %750 = vector.load %arg7[%c0_175, %c0_176] : memref<1x16xf32, #tpu.memory_space<vmem>>, vector<1x16xf32>
    %751 = vector.broadcast %750 : vector<1x16xf32> to vector<2x16xf32>
    %752 = arith.addf %749, %751 : vector<2x16xf32>
    %c0_177 = arith.constant 0 : index
    %c0_178 = arith.constant 0 : index
    %753 = vector.load %arg8[%c0_177, %c0_178] : memref<2x16xf32, #tpu.memory_space<vmem>>, vector<2x16xf32>
    tpu.vector_store %arg8[%c0_177, %c0_178], %752 {strides = array<i32>} : memref<2x16xf32, #tpu.memory_space<vmem>>, vector<2x16xf32>,
    return
  }
  func.func @transform_0(%arg0: i32) -> (i32, i32) {
    %c0_i32 = arith.constant 0 : i32
    %c0_i32_0 = arith.constant 0 : i32
    return %arg0, %c0_i32 : i32, i32
  }
  func.func @transform_1(%arg0: i32) -> i32 {
    %c0_i32 = arith.constant 0 : i32
    %c0_i32_0 = arith.constant 0 : i32
    return %c0_i32 : i32
  }
  func.func @transform_2(%arg0: i32) -> i32 {
    %c0_i32 = arith.constant 0 : i32
    %c0_i32_0 = arith.constant 0 : i32
    return %c0_i32 : i32
  }
  func.func @transform_3(%arg0: i32) -> (i32, i32) {
    %c0_i32 = arith.constant 0 : i32
    %c0_i32_0 = arith.constant 0 : i32
    %c0_i32_1 = arith.constant 0 : i32
    return %c0_i32, %c0_i32_0 : i32, i32
  }
  func.func @transform_4(%arg0: i32) -> (i32, i32) {
    %c0_i32 = arith.constant 0 : i32
    %c0_i32_0 = arith.constant 0 : i32
    %c0_i32_1 = arith.constant 0 : i32
    return %c0_i32, %c0_i32_0 : i32, i32
  }
  func.func @transform_5(%arg0: i32) -> (i32, i32) {
    %c0_i32 = arith.constant 0 : i32
    %c0_i32_0 = arith.constant 0 : i32
    %c0_i32_1 = arith.constant 0 : i32
    return %c0_i32, %c0_i32_0 : i32, i32
  }
  func.func @transform_6(%arg0: i32) -> (i32, i32) {
    %c0_i32 = arith.constant 0 : i32
    %c0_i32_0 = arith.constant 0 : i32
    %c0_i32_1 = arith.constant 0 : i32
    return %c0_i32, %c0_i32_0 : i32, i32
  }
  func.func @transform_7(%arg0: i32) -> (i32, i32) {
    %c0_i32 = arith.constant 0 : i32
    %c0_i32_0 = arith.constant 0 : i32
    return %arg0, %c0_i32 : i32, i32
  }
}

</mosaic_0001>

<bundles_post_ra>
// kernel: tpu_custom_call.1
= control target key start
LH: loop header
LB: loop body
LE: loop exit
PB: predicated region body
PF: predicated region fallthrough
CT: control target
= control target key end

     0   :  { %12 = vsyncpa [#allocation5], 0  ;;  %s2122_s0 = inlined_call_operand.vmem [shape: f32[2,1024], index: 0, kind: input, shape index: {}]   ;;  %s2123_s1 = inlined_call_operand.vmem [shape: f32[128], index: 1, kind: input, shape index: {}]   ;;  %s2124_s2 = inlined_call_operand.vmem [shape: f32[32], index: 2, kind: input, shape index: {}]   ;;  %s2125_s3 = inlined_call_operand.vmem [shape: f32[32,16], index: 3, kind: input, shape index: {}]   ;;  %s2126_s4 = inlined_call_operand.vmem [shape: f32[1,16], index: 4, kind: input, shape index: {}]   ;;  %s2127_s5 = inlined_call_operand.vmem [shape: f32[16,16], index: 5, kind: input, shape index: {}]   ;;  %s2128_s6 = inlined_call_operand.vmem [shape: f32[1,16], index: 6, kind: input, shape index: {}]   ;;  %s2129_s7 = inlined_call_operand.hbm [shape: f32[2,16], index: 7, kind: output, shape index: {}]  }
   0x1   :  { %13 = vsyncpa [#allocation7], 0 }
   0x2   :  { %14 = vsyncpa [#allocation4], 0  ;;  %s22_s26 = sshll.u32 %s2123_s1, 4  ;;  %s31_s29 = sshll.u32 %s2124_s2, 4  ;;  %s23_s26 = int_to_ptr.vmem [resolvable:$true] %s22_s26  ;;  %s32_s29 = int_to_ptr.vmem [resolvable:$true] %s31_s29 }
   0x3   :  { %s1388_s30 = smov [#allocation3]   ;;  %s1389_s8 = smov [#allocation6]  }
   0x4   :  { %25 = dma.vmem_to_smem %s23_s26, 16, %s1388_s30, [#allocation5]  }
   0x5   :  { %34 = dma.vmem_to_smem %s32_s29, 16, %s1389_s8, [#allocation7]  }
   0x6   :  { %1382 = dma.done.wait [#allocation5], 16  }
   0x7   :  { %1383 = vsyncadd [#allocation5], 4294967280 }
   0x8   :  { %1384 = dma.done.wait [#allocation7], 16  }
   0x9   :  { %1385 = vsyncadd [#allocation7], 4294967280 }
   0xa   :  { %51 = sfence }
   0xb   :  { %s56_s9 = sld [smem:[#allocation3]]  ;;  %v1440_v0 = vld [vmem:[%s2122_s0] sm:$0xf]  ;;  %v1447_v1 = vld [vmem:[%s2122_s0 + $0x4] sm:$0xf]  ;;  %vm81_vm0 = vcmask 1041408  }
   0xc   :  { %s1165_s10 = sld [smem:[#allocation3 + $0x20]]  ;;  %v1452_v2 = vld [vmem:[%s2122_s0 + $0x8] sm:$0xf]  ;;  %v1457_v4 = vld [vmem:[%s2122_s0 + $0xc] sm:$0xf]  ;;  %vm87_vm1 = vcmask 1024  }
   0xd   :  { %s1166_s11 = sld [smem:[#allocation3 + $0x40]]  ;;  %vm119_vm2 = vcmask 9224   ;;  %vm151_vm3 = vcmask 17424   ;;  %vm183_vm4 = vcmask 25624   ;;  %vm215_vm5 = vcmask 33824  }
   0xe   :  { %s1167_s12 = sld [smem:[#allocation3 + $0x60]]  ;;  %vm247_vm6 = vcmask 42024   ;;  %vm279_vm7 = vcmask 50224   ;;  %vm311_vm8 = vcmask 58424   ;;  %vm343_vm9 = vcmask 66624  }
   0xf   :  { %s1442_s2 = sld [smem:[#allocation6]]  ;;  %vm375_vm10 = vcmask 74824   ;;  %vm407_vm11 = vcmask 83024   ;;  %vm439_vm12 = vcmask 91224   ;;  %vm471_vm13 = vcmask 99424  }
  0x10   :  { %s1168_s16 = sld [smem:[#allocation3 + $0x1]]  ;;  %vm503_vm14 = vcmask 107624   ;;  %vm535_vm15 = vcmask 115824  }
  0x11   :  { %v57_v3 = vstv %s56_s9  ;;  %s1169_s19 = sld [smem:[#allocation3 + $0x21]] }
  0x12   :  { %v58_v5 = vmul.f32 %v57_v3, %v1440_v0  ;;  %v60_v6 = vstv %s1165_s10  ;;  %s1170_s22 = sld [smem:[#allocation3 + $0x41]] }
  0x13   :  { %v61_v7 = vmul.f32 %v60_v6, %v1447_v1  ;;  %v64_v8 = vstv %s1166_s11  ;;  %s1171_s23 = sld [smem:[#allocation3 + $0x61]] }
  0x14   :  { %v65_v9 = vmul.f32 %v64_v8, %v1452_v2  ;;  %v68_v10 = vstv %s1167_s12  ;;  %s1462_s24 = sld [smem:[#allocation6 + $0x1]] }
  0x15   :  { %v62_v11 = vadd.f32 %v61_v7, %v58_v5  ;;  %v69_v12 = vmul.f32 %v68_v10, %v1457_v4  ;;  %s1173_s25 = sld [smem:[#allocation3 + $0x2]]  ;;  %v72_v17 = vstv %s1442_s2 }
  0x16   :  { %v90_v13 = vstv %s1168_s16  ;;  %s1174_s26 = sld [smem:[#allocation3 + $0x22]] }
  0x17   :  { %v66_v14 = vadd.f32 %v65_v9, %v62_v11  ;;  %v91_v15 = vmul.f32 %v90_v13, %v1440_v0  ;;  %v93_v16 = vstv %s1169_s19  ;;  %s1175_s27 = sld [smem:[#allocation3 + $0x42]] }
  0x18   :  { %v94_v18 = vmul.f32 %v93_v16, %v1447_v1  ;;  %v97_v19 = vstv %s1170_s22  ;;  %s1176_s28 = sld [smem:[#allocation3 + $0x62]] }
  0x19   :  { %v70_v20 = vadd.f32 %v69_v12, %v66_v14  ;;  %v98_v21 = vmul.f32 %v97_v19, %v1452_v2  ;;  %v101_v22 = vstv %s1171_s23  ;;  %s1469_s29 = sld [smem:[#allocation6 + $0x2]] }
  0x1a   :  { %v95_v23 = vadd.f32 %v94_v18, %v91_v15  ;;  %v102_v24 = vmul.f32 %v101_v22, %v1457_v4  ;;  %s1178_s30 = sld [smem:[#allocation3 + $0x3]]  ;;  %v105_v31 = vstv %s1462_s24 }
  0x1b   :  { %v73_v25 = vadd.f32 %v72_v17, %v70_v20  ;;  %v122_v26 = vstv %s1173_s25  ;;  %s1179_s8 = sld [smem:[#allocation3 + $0x23]] }
  0x1c   :  { %v99_v27 = vadd.f32 %v98_v21, %v95_v23  ;;  %v123_v28 = vmul.f32 %v122_v26, %v1440_v0  ;;  %v125_v29 = vstv %s1174_s26  ;;  %s1180_s9 = sld [smem:[#allocation3 + $0x43]] }
  0x1d   :  { %v74_v30 = vmax.f32 %v73_v25, 0.0  ;;  %v126_v32 = vmul.f32 %v125_v29, %v1447_v1  ;;  %v129_v33 = vstv %s1175_s27  ;;  %s1475_s10 = sld [smem:[#allocation3 + $0x63]] }
  0x1e   :  { %v103_v34 = vadd.f32 %v102_v24, %v99_v27  ;;  %v130_v35 = vmul.f32 %v129_v33, %v1452_v2  ;;  %v133_v36 = vstv %s1176_s28  ;;  %s1183_s11 = sld [smem:[#allocation3 + $0x4]] }
  0x1f   :  { %76 = vst [vmem:[#allocation1] ss:$4 sm:$0xff] %v74_v30  ;;  %v127_v37 = vadd.f32 %v126_v32, %v123_v28  ;;  %v134_v38 = vmul.f32 %v133_v36, %v1457_v4  ;;  %s1184_s12 = sld [smem:[#allocation3 + $0x24]]  ;;  %v137_v44 = vstv %s1469_s29 }
  0x20   :  { %v106_v39 = vadd.f32 %v105_v31, %v103_v34  ;;  %v154_v40 = vstv %s1178_s30  ;;  %s1480_s1 = sld [smem:[#allocation3 + $0x44]] }
  0x21   :  { %v131_v41 = vadd.f32 %v130_v35, %v127_v37  ;;  %v155_v42 = vmul.f32 %v154_v40, %v1440_v0  ;;  %v157_v43 = vstv %s1179_s8  ;;  %s1484_s13 = sld [smem:[#allocation6 + $0x3]] }
  0x22   :  { %v158_v45 = vmul.f32 %v157_v43, %v1447_v1  ;;  %v161_v46 = vstv %s1180_s9  ;;  %v107_v47 = vmax.f32 %v106_v39, 0.0  ;;  %s1488_s2 = sld [smem:[#allocation3 + $0x64]] }
  0x23   :  { %v135_v48 = vadd.f32 %v134_v38, %v131_v41  ;;  %v162_v49 = vmul.f32 %v161_v46, %v1452_v2  ;;  %v165_v50 = vstv %s1475_s10  ;;  %s1490_s14 = sld [smem:[#allocation3 + $0x5]] }
  0x24   :  { %v159_v51 = vadd.f32 %v158_v45, %v155_v42  ;;  %v186_v52 = vstv %s1183_s11  ;;  %s1492_s15 = sld [smem:[#allocation3 + $0x25]]  ;;  %v166_v56 = vmul.f32 %v165_v50, %v1457_v4 }
  0x25   :  { %v138_v55 = vadd.f32 %v137_v44, %v135_v48  ;;  %v187_v57 = vmul.f32 %v186_v52, %v1440_v0  ;;  %v189_v58 = vstv %s1184_s12  ;;  %s1500_s16 = sld [smem:[#allocation3 + $0x45]] }
  0x26   :  { %v77_v53 = vld.sshfl [vmem:[#allocation1] sm:$0xff pattern:$0x73625140]  ;;  %v78_v54 = vld.sshfl [vmem:[#allocation1 + $0x8] sm:$0xff pattern:$0x73625140]  ;;  %v163_v61 = vadd.f32 %v162_v49, %v159_v51  ;;  %v190_v62 = vmul.f32 %v189_v58, %v1447_v1  ;;  %v193_v3 = vstv %s1480_s1 }
  0x27   :  { %v82_v59 = vsel %vm81_vm0, %v77_v53, 0.0  ;;  %v83_v60 = vsel %vm81_vm0, %v78_v54, 0.0  ;;  %109 = vst [vmem:[#allocation1] ss:$4 sm:$0xff] %v107_v47  ;;  %s1502_s17 = sld [smem:[#allocation6 + $0x4]]  ;;  %v139_v5 = vmax.f32 %v138_v55, 0.0  ;;  %v194_v7 = vmul.f32 %v193_v3, %v1452_v2 }
  0x28   :  { %v84_v63 = vadd.f32 %v83_v60, %v82_v59  ;;  %v191_v6 = vadd.f32 %v190_v62, %v187_v57  ;;  %s1505_s18 = sld [smem:[#allocation3 + $0x65]]  ;;  %v167_v8 = vadd.f32 %v166_v56, %v163_v61  ;;  %v197_v9 = vstv %s1488_s2 }
  0x29   :  { %v218_v10 = vstv %s1490_s14  ;;  %s1510_s19 = sld [smem:[#allocation3 + $0x6]]  ;;  %v169_v12 = vstv %s1484_s13  ;;  %v198_v16 = vmul.f32 %v197_v9, %v1457_v4 }
  0x2a   :  { %85 = vadd.xlane.f32.xlu0 %v84_v63  ;;  %v221_v11 = vstv %s1492_s15  ;;  %s1513_s20 = sld [smem:[#allocation3 + $0x26]]  ;;  %v195_v15 = vadd.f32 %v194_v7, %v191_v6  ;;  %v219_v17 = vmul.f32 %v218_v10, %v1440_v0  ;;  %v170_v21 = vadd.f32 %v169_v12, %v167_v8 }
  0x2b   :  { %v222_v18 = vmul.f32 %v221_v11, %v1447_v1  ;;  %v225_v22 = vstv %s1500_s16  ;;  %s1521_s21 = sld [smem:[#allocation3 + $0x46]] }
  0x2c   :  { %s1523_s22 = sld [smem:[#allocation6 + $0x5]]  ;;  %v199_v24 = vadd.f32 %v198_v16, %v195_v15  ;;  %v226_v26 = vmul.f32 %v225_v22, %v1452_v2  ;;  %v171_v27 = vmax.f32 %v170_v21, 0.0 }
  0x2d   :  { %s1525_s23 = sld [smem:[#allocation3 + $0x66]]  ;;  %v223_v25 = vadd.f32 %v222_v18, %v219_v17  ;;  %v201_v28 = vstv %s1502_s17 }
  0x2e   :  { %v110_v13 = vld.sshfl [vmem:[#allocation1] sm:$0xff pattern:$0x73625140]  ;;  %v111_v14 = vld.sshfl [vmem:[#allocation1 + $0x8] sm:$0xff pattern:$0x73625140]  ;;  %v229_v29 = vstv %s1505_s18  ;;  %v202_v34 = vadd.f32 %v201_v28, %v199_v24 }
  0x2f   :  { %141 = vst [vmem:[#allocation1] ss:$4 sm:$0xff] %v139_v5  ;;  %v114_v19 = vsel %vm81_vm0, %v110_v13, 0.0  ;;  %v115_v20 = vsel %vm81_vm0, %v111_v14, 0.0  ;;  %s1528_s24 = sld [smem:[#allocation3 + $0x7]]  ;;  %v250_v30 = vstv %s1510_s19  ;;  %v227_v35 = vadd.f32 %v226_v26, %v223_v25 }
  0x30   :  { %v116_v23 = vadd.f32 %v115_v20, %v114_v19  ;;  %s1533_s25 = sld [smem:[#allocation3 + $0x27]]  ;;  %v253_v31 = vstv %s1513_s20  ;;  %v230_v36 = vmul.f32 %v229_v29, %v1457_v4  ;;  %v251_v37 = vmul.f32 %v250_v30, %v1440_v0 }
  0x31   :  { %v254_v40 = vmul.f32 %v253_v31, %v1447_v1  ;;  %v257_v41 = vstv %s1521_s21  ;;  %s1542_s26 = sld [smem:[#allocation3 + $0x47]]  ;;  %v203_v43 = vmax.f32 %v202_v34, 0.0 }
  0x32   :  { %117 = vadd.xlane.f32.xlu0 %v116_v23  ;;  %s1544_s27 = sld [smem:[#allocation3 + $0x67]]  ;;  %v231_v44 = vadd.f32 %v230_v36, %v227_v35  ;;  %v233_v45 = vstv %s1523_s22  ;;  %v258_v46 = vmul.f32 %v257_v41, %v1452_v2 }
  0x33   :  { %s1548_s28 = sld [smem:[#allocation3 + $0x8]]  ;;  %v255_v47 = vadd.f32 %v254_v40, %v251_v37  ;;  %v261_v48 = vstv %s1525_s23 }
  0x34   :  { %s1553_s29 = sld [smem:[#allocation3 + $0x28]]  ;;  %v234_v53 = vadd.f32 %v233_v45, %v231_v44  ;;  %v262_v54 = vmul.f32 %v261_v48, %v1457_v4 }
  0x35   :  { %v282_v49 = vstv %s1528_s24  ;;  %s1555_s30 = sld [smem:[#allocation6 + $0x6]]  ;;  %v259_v59 = vadd.f32 %v258_v46, %v255_v47 }
  0x36   :  { %v142_v32 = vld.sshfl [vmem:[#allocation1] sm:$0xff pattern:$0x73625140]  ;;  %v143_v33 = vld.sshfl [vmem:[#allocation1 + $0x8] sm:$0xff pattern:$0x73625140]  ;;  %v285_v50 = vstv %s1533_s25  ;;  %v283_v55 = vmul.f32 %v282_v49, %v1440_v0 }
  0x37   :  { %v146_v38 = vsel %vm81_vm0, %v142_v32, 0.0  ;;  %v147_v39 = vsel %vm81_vm0, %v143_v33, 0.0  ;;  %173 = vst [vmem:[#allocation1] ss:$4 sm:$0xff] %v171_v27  ;;  %v286_v56 = vmul.f32 %v285_v50, %v1447_v1  ;;  %v289_v60 = vstv %s1542_s26  ;;  %s1563_s8 = sld [smem:[#allocation3 + $0x48]] }
  0x38   :  { %v148_v42 = vadd.f32 %v147_v39, %v146_v38  ;;  %s1565_s9 = sld [smem:[#allocation6 + $0x7]]  ;;  %v235_v62 = vmax.f32 %v234_v53, 0.0  ;;  %v290_v3 = vmul.f32 %v289_v60, %v1452_v2  ;;  %v263_v5 = vadd.f32 %v262_v54, %v259_v59 }
  0x39   :  { %v287_v63 = vadd.f32 %v286_v56, %v283_v55  ;;  %s1568_s10 = sld [smem:[#allocation3 + $0x68]]  ;;  %v293_v6 = vstv %s1544_s27  ;;  %v314_v7 = vstv %s1548_s28 }
  0x3a   :  { %149 = vadd.xlane.f32.xlu1 %v148_v42  ;;  %v317_v8 = vstv %s1553_s29  ;;  %s1573_s11 = sld [smem:[#allocation3 + $0x9]]  ;;  %v294_v13 = vmul.f32 %v293_v6, %v1457_v4  ;;  %v315_v14 = vmul.f32 %v314_v7, %v1440_v0 }
  0x3b   :  { %v265_v9 = vstv %s1555_s30  ;;  %s1576_s12 = sld [smem:[#allocation3 + $0x29]]  ;;  %v291_v12 = vadd.f32 %v290_v3, %v287_v63  ;;  %v318_v15 = vmul.f32 %v317_v8, %v1447_v1 }
  0x3c   :  { %v266_v18 = vadd.f32 %v265_v9, %v263_v5  ;;  %s1584_s1 = sld [smem:[#allocation3 + $0x49]] }
  0x3d   :  { %v321_v19 = vstv %s1563_s8  ;;  %s1586_s13 = sld [smem:[#allocation6 + $0x8]]  ;;  %v295_v21 = vadd.f32 %v294_v13, %v291_v12  ;;  %v319_v22 = vadd.f32 %v318_v15, %v315_v14 }
  0x3e   :  { %v174_v51 = vld.sshfl [vmem:[#allocation1] sm:$0xff pattern:$0x73625140]  ;;  %v175_v52 = vld.sshfl [vmem:[#allocation1 + $0x8] sm:$0xff pattern:$0x73625140]  ;;  %v322_v23 = vmul.f32 %v321_v19, %v1452_v2  ;;  %v297_v25 = vstv %s1565_s9 }
  0x3f   :  { %v178_v57 = vsel %vm81_vm0, %v174_v51, 0.0  ;;  %v179_v58 = vsel %vm81_vm0, %v175_v52, 0.0  ;;  %205 = vst [vmem:[#allocation1] ss:$4 sm:$0xff] %v203_v43  ;;  %s1588_s2 = sld [smem:[#allocation3 + $0x69]]  ;;  %v267_v24 = vmax.f32 %v266_v18, 0.0  ;;  %v325_v26 = vstv %s1568_s10 }
  0x40   :  { %v180_v61 = vadd.f32 %v179_v58, %v178_v57  ;;  %s1591_s14 = sld [smem:[#allocation3 + $0xa]]  ;;  %v346_v27 = vstv %s1573_s11  ;;  %v298_v31 = vadd.f32 %v297_v25, %v295_v21  ;;  %v323_v32 = vadd.f32 %v322_v23, %v319_v22 }
  0x41   :  { %s1596_s15 = sld [smem:[#allocation3 + $0x2a]]  ;;  %v349_v28 = vstv %s1576_s12  ;;  %v326_v33 = vmul.f32 %v325_v26, %v1457_v4  ;;  %v347_v34 = vmul.f32 %v346_v27, %v1440_v0 }
  0x42   :  { %181 = vadd.xlane.f32.xlu1 %v180_v61  ;;  %v350_v37 = vmul.f32 %v349_v28, %v1447_v1  ;;  %v353_v38 = vstv %s1584_s1  ;;  %s1605_s16 = sld [smem:[#allocation3 + $0x4a]]  ;;  %v299_v40 = vmax.f32 %v298_v31, 0.0 }
  0x43   :  { %s1607_s17 = sld [smem:[#allocation3 + $0x6a]]  ;;  %v327_v41 = vadd.f32 %v326_v33, %v323_v32  ;;  %v329_v42 = vstv %s1586_s13  ;;  %v354_v43 = vmul.f32 %v353_v38, %v1452_v2 }
  0x44   :  { %s1611_s18 = sld [smem:[#allocation3 + $0xb]]  ;;  %v351_v44 = vadd.f32 %v350_v37, %v347_v34 }
  0x45   :  { %v357_v45 = vstv %s1588_s2  ;;  %s1616_s19 = sld [smem:[#allocation3 + $0x2b]]  ;;  %v330_v50 = vadd.f32 %v329_v42, %v327_v41 }
  0x46   :  { %v206_v10 = vld.sshfl [vmem:[#allocation1] sm:$0xff pattern:$0x73625140]  ;;  %v207_v11 = vld.sshfl [vmem:[#allocation1 + $0x8] sm:$0xff pattern:$0x73625140]  ;;  %v378_v46 = vstv %s1591_s14  ;;  %v358_v51 = vmul.f32 %v357_v45, %v1457_v4  ;;  %v355_v56 = vadd.f32 %v354_v43, %v351_v44 }
  0x47   :  { %v210_v16 = vsel %vm81_vm0, %v206_v10, 0.0  ;;  %v211_v17 = vsel %vm81_vm0, %v207_v11, 0.0  ;;  %237 = vst [vmem:[#allocation1] ss:$4 sm:$0xff] %v235_v62  ;;  %v381_v47 = vstv %s1596_s15  ;;  %s1618_s20 = sld [smem:[#allocation6 + $0x9]]  ;;  %v379_v52 = vmul.f32 %v378_v46, %v1440_v0 }
  0x48   :  { %v212_v20 = vadd.f32 %v211_v17, %v210_v16  ;;  %v382_v53 = vmul.f32 %v381_v47, %v1447_v1  ;;  %v385_v57 = vstv %s1605_s16  ;;  %s1626_s21 = sld [smem:[#allocation3 + $0x4b]]  ;;  %v331_v59 = vmax.f32 %v330_v50, 0.0 }
  0x49   :  { %s1628_s22 = sld [smem:[#allocation6 + $0xa]]  ;;  %v386_v61 = vmul.f32 %v385_v57, %v1452_v2  ;;  %v359_v62 = vadd.f32 %v358_v51, %v355_v56  ;;  %v389_v63 = vstv %s1607_s17 }
  0x4a   :  { %213 = vadd.xlane.f32.xlu2 %v212_v20  ;;  %v383_v60 = vadd.f32 %v382_v53, %v379_v52  ;;  %s1631_s23 = sld [smem:[#allocation3 + $0x6b]]  ;;  %v410_v3 = vstv %s1611_s18  ;;  %v390_v10 = vmul.f32 %v389_v63, %v1457_v4 }
  0x4b   :  { %v413_v5 = vstv %s1616_s19  ;;  %s1636_s24 = sld [smem:[#allocation3 + $0xc]]  ;;  %v411_v11 = vmul.f32 %v410_v3, %v1440_v0 }
  0x4c   :  { %s1639_s25 = sld [smem:[#allocation3 + $0x2c]]  ;;  %v387_v9 = vadd.f32 %v386_v61, %v383_v60  ;;  %v414_v12 = vmul.f32 %v413_v5, %v1447_v1 }
  0x4d   :  { %v361_v6 = vstv %s1618_s20  ;;  %s1647_s26 = sld [smem:[#allocation6 + $0xb]] }
  0x4e   :  { %v238_v29 = vld.sshfl [vmem:[#allocation1] sm:$0xff pattern:$0x73625140]  ;;  %v239_v30 = vld.sshfl [vmem:[#allocation1 + $0x8] sm:$0xff pattern:$0x73625140]  ;;  %v362_v15 = vadd.f32 %v361_v6, %v359_v62  ;;  %v417_v16 = vstv %s1626_s21  ;;  %v391_v18 = vadd.f32 %v390_v10, %v387_v9  ;;  %v415_v19 = vadd.f32 %v414_v12, %v411_v11 }
  0x4f   :  { %v242_v35 = vsel %vm81_vm0, %v238_v29, 0.0  ;;  %v243_v36 = vsel %vm81_vm0, %v239_v30, 0.0  ;;  %269 = vst [vmem:[#allocation1] ss:$4 sm:$0xff] %v267_v24  ;;  %s1649_s27 = sld [smem:[#allocation3 + $0x4c]]  ;;  %v418_v20 = vmul.f32 %v417_v16, %v1452_v2  ;;  %v393_v22 = vstv %s1628_s22 }
  0x50   :  { %v244_v39 = vadd.f32 %v243_v36, %v242_v35  ;;  %s1651_s28 = sld [smem:[#allocation3 + $0x6c]]  ;;  %v363_v21 = vmax.f32 %v362_v15, 0.0  ;;  %v421_v23 = vstv %s1631_s23  ;;  %v394_v28 = vadd.f32 %v393_v22, %v391_v18 }
  0x51   :  { %s1654_s29 = sld [smem:[#allocation3 + $0xd]]  ;;  %v442_v24 = vstv %s1636_s24  ;;  %v419_v29 = vadd.f32 %v418_v20, %v415_v19  ;;  %v422_v30 = vmul.f32 %v421_v23, %v1457_v4 }
  0x52   :  { %245 = vadd.xlane.f32.xlu2 %v244_v39  ;;  %s1658_s30 = sld [smem:[#allocation3 + $0x2d]]  ;;  %v445_v25 = vstv %s1639_s25  ;;  %v443_v33 = vmul.f32 %v442_v24, %v1440_v0  ;;  %v395_v37 = vmax.f32 %v394_v28, 0.0 }
  0x53   :  { %v446_v34 = vmul.f32 %v445_v25, %v1447_v1  ;;  %s1667_s8 = sld [smem:[#allocation3 + $0x4d]]  ;;  %v423_v38 = vadd.f32 %v422_v30, %v419_v29  ;;  %v425_v39 = vstv %s1647_s26 }
  0x54   :  { %s1670_s9 = sld [smem:[#allocation3 + $0x6d]] }
  0x55   :  { %v449_v36 = vstv %s1649_s27  ;;  %s1674_s10 = sld [smem:[#allocation3 + $0xe]]  ;;  %v447_v41 = vadd.f32 %v446_v34, %v443_v33  ;;  %v426_v47 = vadd.f32 %v425_v39, %v423_v38 }
  0x56   :  { %v270_v48 = vld.sshfl [vmem:[#allocation1] sm:$0xff pattern:$0x73625140]  ;;  %v271_v49 = vld.sshfl [vmem:[#allocation1 + $0x8] sm:$0xff pattern:$0x73625140]  ;;  %v450_v42 = vmul.f32 %v449_v36, %v1452_v2 }
  0x57   :  { %v274_v54 = vsel %vm81_vm0, %v270_v48, 0.0  ;;  %v275_v55 = vsel %vm81_vm0, %v271_v49, 0.0  ;;  %301 = vst [vmem:[#allocation1] ss:$4 sm:$0xff] %v299_v40  ;;  %v453_v40 = vstv %s1651_s28  ;;  %v474_v43 = vstv %s1654_s29  ;;  %s1679_s11 = sld [smem:[#allocation3 + $0x2e]] }
  0x58   :  { %v276_v58 = vadd.f32 %v275_v55, %v274_v54  ;;  %v477_v44 = vstv %s1658_s30  ;;  %s1681_s12 = sld [smem:[#allocation6 + $0xc]]  ;;  %v454_v48 = vmul.f32 %v453_v40, %v1457_v4  ;;  %v475_v49 = vmul.f32 %v474_v43, %v1440_v0 }
  0x59   :  { %v478_v50 = vmul.f32 %v477_v44, %v1447_v1  ;;  %v451_v53 = vadd.f32 %v450_v42, %v447_v41  ;;  %v481_v54 = vstv %s1667_s8  ;;  %s1689_s1 = sld [smem:[#allocation3 + $0x4e]]  ;;  %v427_v56 = vmax.f32 %v426_v47, 0.0 }
  0x5a   :  { %277 = vadd.xlane.f32.xlu0 %v276_v58  ;;  %s1691_s13 = sld [smem:[#allocation6 + $0xd]]  ;;  %v482_v58 = vmul.f32 %v481_v54, %v1452_v2  ;;  %v485_v60 = vstv %s1670_s9 }
  0x5b   :  { %v479_v57 = vadd.f32 %v478_v50, %v475_v49  ;;  %s1694_s2 = sld [smem:[#allocation3 + $0xf]]  ;;  %v506_v61 = vstv %s1674_s10 }
  0x5c   :  { %s1699_s14 = sld [smem:[#allocation3 + $0x2f]] }
  0x5d   :  { %v509_v62 = vstv %s1679_s11  ;;  %s1702_s15 = sld [smem:[#allocation3 + $0x6e]]  ;;  %v483_v6 = vadd.f32 %v482_v58, %v479_v57 }
  0x5e   :  { %v302_v7 = vld.sshfl [vmem:[#allocation1] sm:$0xff pattern:$0x73625140]  ;;  %v303_v8 = vld.sshfl [vmem:[#allocation1 + $0x8] sm:$0xff pattern:$0x73625140]  ;;  %v457_v63 = vstv %s1681_s12  ;;  %v510_v9 = vmul.f32 %v509_v62, %v1447_v1 }
  0x5f   :  { %v306_v13 = vsel %vm81_vm0, %v302_v7, 0.0  ;;  %v307_v14 = vsel %vm81_vm0, %v303_v8, 0.0  ;;  %333 = vst [vmem:[#allocation1] ss:$4 sm:$0xff] %v331_v59  ;;  %v455_v59 = vadd.f32 %v454_v48, %v451_v53  ;;  %v486_v7 = vmul.f32 %v485_v60, %v1457_v4  ;;  %s1710_s16 = sld [smem:[#allocation3 + $0x4f]] }
  0x60   :  { %v308_v17 = vadd.f32 %v307_v14, %v306_v13  ;;  %v507_v8 = vmul.f32 %v506_v61, %v1440_v0  ;;  %v513_v13 = vstv %s1689_s1  ;;  %s1712_s17 = sld [smem:[#allocation3 + $0x6f]]  ;;  %v489_v19 = vstv %s1691_s13 }
  0x61   :  { %v458_v12 = vadd.f32 %v457_v63, %v455_v59  ;;  %v487_v15 = vadd.f32 %v486_v7, %v483_v6  ;;  %s1715_s18 = sld [smem:[#allocation3 + $0x10]]  ;;  %v538_v20 = vstv %s1694_s2 }
  0x62   :  { %309 = vadd.xlane.f32.xlu1 %v308_v17  ;;  %v511_v16 = vadd.f32 %v510_v9, %v507_v8  ;;  %v514_v17 = vmul.f32 %v513_v13, %v1452_v2  ;;  %s1720_s19 = sld [smem:[#allocation3 + $0x30]] }
  0x63   :  { %v459_v18 = vmax.f32 %v458_v12, 0.0  ;;  %v517_v22 = vstv %s1702_s15  ;;  %s1723_s20 = sld [smem:[#allocation6 + $0xe]]  ;;  %v490_v25 = vadd.f32 %v489_v19, %v487_v15 }
  0x64   :  { %s1731_s21 = sld [smem:[#allocation3 + $0x50]] }
  0x65   :  { %s1733_s22 = sld [smem:[#allocation6 + $0xf]]  ;;  %v491_v34 = vmax.f32 %v490_v25, 0.0 }
  0x66   :  { %v334_v26 = vld.sshfl [vmem:[#allocation1] sm:$0xff pattern:$0x73625140]  ;;  %v335_v27 = vld.sshfl [vmem:[#allocation1 + $0x8] sm:$0xff pattern:$0x73625140]  ;;  %v549_v38 = vstv %s1712_s17 }
  0x67   :  { %v338_v31 = vsel %vm81_vm0, %v334_v26, 0.0  ;;  %v339_v32 = vsel %vm81_vm0, %v335_v27, 0.0  ;;  %365 = vst [vmem:[#allocation1] ss:$4 sm:$0xff] %v363_v21  ;;  %v541_v21 = vstv %s1699_s14  ;;  %v515_v26 = vadd.f32 %v514_v17, %v511_v16  ;;  %s1736_s23 = sld [smem:[#allocation3 + $0x11]] }
  0x68   :  { %v340_v35 = vadd.f32 %v339_v32, %v338_v31  ;;  %v539_v27 = vmul.f32 %v538_v20, %v1440_v0  ;;  %v542_v28 = vmul.f32 %v541_v21, %v1447_v1  ;;  %v518_v31 = vmul.f32 %v517_v22, %v1457_v4  ;;  %s1741_s24 = sld [smem:[#allocation3 + $0x31]] }
  0x69   :  { %v545_v32 = vstv %s1710_s16  ;;  %v570_v39 = vstv %s1715_s18  ;;  %v573_v40 = vstv %s1720_s19  ;;  %v521_v41 = vstv %s1723_s20  ;;  %s1744_s25 = sld [smem:[#allocation3 + $0x70]] }
  0x6a   :  { %341 = vadd.xlane.f32.xlu2 %v340_v35  ;;  %v543_v35 = vadd.f32 %v542_v28, %v539_v27  ;;  %v546_v36 = vmul.f32 %v545_v32, %v1452_v2  ;;  %v574_v47 = vmul.f32 %v573_v40, %v1447_v1  ;;  %s1752_s26 = sld [smem:[#allocation3 + $0x51]] }
  0x6b   :  { %s1754_s27 = sld [smem:[#allocation3 + $0x71]]  ;;  %v553_v57 = vstv %s1733_s22 }
  0x6c   :  { %v547_v44 = vadd.f32 %v546_v36, %v543_v35  ;;  %s1757_s28 = sld [smem:[#allocation3 + $0x12]] }
  0x6d   :  { %v602_v58 = vstv %s1736_s23  ;;  %s1762_s29 = sld [smem:[#allocation3 + $0x32]] }
  0x6e   :  { %v366_v45 = vld.sshfl [vmem:[#allocation1] sm:$0xff pattern:$0x73625140]  ;;  %v367_v46 = vld.sshfl [vmem:[#allocation1 + $0x8] sm:$0xff pattern:$0x73625140]  ;;  %v605_v59 = vstv %s1741_s24 }
  0x6f   :  { %v370_v51 = vsel %vm81_vm0, %v366_v45, 0.0  ;;  %v371_v52 = vsel %vm81_vm0, %v367_v46, 0.0  ;;  %397 = vst [vmem:[#allocation1] ss:$4 sm:$0xff] %v395_v37  ;;  %v519_v37 = vadd.f32 %v518_v31, %v515_v26  ;;  %v550_v45 = vmul.f32 %v549_v38, %v1457_v4  ;;  %s1765_s30 = sld [smem:[#allocation6 + $0x10]] }
  0x70   :  { %v372_v55 = vadd.f32 %v371_v52, %v370_v51  ;;  %v571_v46 = vmul.f32 %v570_v39, %v1440_v0  ;;  %v577_v51 = vstv %s1731_s21  ;;  %v581_v60 = vstv %s1744_s25  ;;  %s1773_s8 = sld [smem:[#allocation3 + $0x52]] }
  0x71   :  { %v522_v50 = vadd.f32 %v521_v41, %v519_v37  ;;  %v551_v53 = vadd.f32 %v550_v45, %v547_v44  ;;  %v606_v6 = vmul.f32 %v605_v59, %v1447_v1  ;;  %v582_v9 = vmul.f32 %v581_v60, %v1457_v4  ;;  %s1775_s9 = sld [smem:[#allocation6 + $0x11]] }
  0x72   :  { %373 = vadd.xlane.f32.xlu0 %v372_v55  ;;  %v575_v54 = vadd.f32 %v574_v47, %v571_v46  ;;  %v578_v55 = vmul.f32 %v577_v51, %v1452_v2  ;;  %s1778_s10 = sld [smem:[#allocation3 + $0x13]]  ;;  %v613_v16 = vstv %s1754_s27  ;;  %v634_v17 = vstv %s1757_s28 }
  0x73   :  { %v554_v63 = vadd.f32 %v553_v57, %v551_v53  ;;  %s1783_s11 = sld [smem:[#allocation3 + $0x33]] }
  0x74   :  { %s1786_s12 = sld [smem:[#allocation3 + $0x72]] }
  0x75   :  { %v555_v12 = vmax.f32 %v554_v63, 0.0  ;;  %v585_v19 = vstv %s1765_s30  ;;  %s1794_s1 = sld [smem:[#allocation3 + $0x53]] }
  0x76   :  { %v398_v3 = vld.sshfl [vmem:[#allocation1] sm:$0xff pattern:$0x73625140]  ;;  %v399_v5 = vld.sshfl [vmem:[#allocation1 + $0x8] sm:$0xff pattern:$0x73625140] }
  0x77   :  { %v402_v10 = vsel %vm81_vm0, %v398_v3, 0.0  ;;  %v403_v11 = vsel %vm81_vm0, %v399_v5, 0.0  ;;  %429 = vst [vmem:[#allocation1] ss:$4 sm:$0xff] %v427_v56  ;;  %v523_v56 = vmax.f32 %v522_v50, 0.0  ;;  %v579_v3 = vadd.f32 %v578_v55, %v575_v54  ;;  %s1796_s13 = sld [smem:[#allocation3 + $0x73]] }
  0x78   :  { %v404_v14 = vadd.f32 %v403_v11, %v402_v10  ;;  %v603_v5 = vmul.f32 %v602_v58, %v1440_v0  ;;  %v609_v10 = vstv %s1752_s26  ;;  %s1799_s2 = sld [smem:[#allocation3 + $0x14]]  ;;  %v617_v35 = vstv %s1775_s9 }
  0x79   :  { %v583_v15 = vadd.f32 %v582_v9, %v579_v3  ;;  %v666_v36 = vstv %s1778_s10  ;;  %v669_v37 = vstv %s1783_s11  ;;  %s1804_s14 = sld [smem:[#allocation3 + $0x34]] }
  0x7a   :  { %405 = vadd.xlane.f32.xlu1 %v404_v14  ;;  %v607_v13 = vadd.f32 %v606_v6, %v603_v5  ;;  %v610_v14 = vmul.f32 %v609_v10, %v1452_v2  ;;  %v645_v38 = vstv %s1786_s12  ;;  %s1807_s15 = sld [smem:[#allocation6 + $0x12]]  ;;  %v670_v44 = vmul.f32 %v669_v37, %v1447_v1 }
  0x7b   :  { %v586_v28 = vadd.f32 %v585_v19, %v583_v15  ;;  %v646_v47 = vmul.f32 %v645_v38, %v1457_v4  ;;  %s1815_s16 = sld [smem:[#allocation3 + $0x54]]  ;;  %v1860_v19 = vld [vmem:[%s2122_s0 + $0x4] sm:$0xf] }
  0x7c   :  { %v611_v22 = vadd.f32 %v610_v14, %v607_v13  ;;  %s1817_s17 = sld [smem:[#allocation6 + $0x13]] }
  0x7d   :  { %s1820_s18 = sld [smem:[#allocation3 + $0x15]]  ;;  %v677_v54 = vstv %s1796_s13 }
  0x7e   :  { %v430_v23 = vld.sshfl [vmem:[#allocation1] sm:$0xff pattern:$0x73625140]  ;;  %v431_v24 = vld.sshfl [vmem:[#allocation1 + $0x8] sm:$0xff pattern:$0x73625140]  ;;  %v698_v55 = vstv %s1799_s2 }
  0x7f   :  { %v434_v29 = vsel %vm81_vm0, %v430_v23, 0.0  ;;  %v435_v30 = vsel %vm81_vm0, %v431_v24, 0.0  ;;  %461 = vst [vmem:[#allocation1] ss:$4 sm:$0xff] %v459_v18  ;;  %v637_v18 = vstv %s1762_s29  ;;  %v614_v23 = vmul.f32 %v613_v16, %v1457_v4  ;;  %s1825_s19 = sld [smem:[#allocation3 + $0x35]] }
  0x80   :  { %v436_v33 = vadd.f32 %v435_v30, %v434_v29  ;;  %v635_v24 = vmul.f32 %v634_v17, %v1440_v0  ;;  %v638_v25 = vmul.f32 %v637_v18, %v1447_v1  ;;  %v641_v29 = vstv %s1773_s8  ;;  %s1828_s20 = sld [smem:[#allocation3 + $0x74]] }
  0x81   :  { %v615_v31 = vadd.f32 %v614_v23, %v611_v22  ;;  %v649_v57 = vstv %s1807_s15  ;;  %s1836_s21 = sld [smem:[#allocation3 + $0x55]]  ;;  %v1868_v23 = vld [vmem:[%s2122_s0 + $0xc] sm:$0xf] }
  0x82   :  { %437 = vadd.xlane.f32.xlu2 %v436_v33  ;;  %v639_v32 = vadd.f32 %v638_v25, %v635_v24  ;;  %v642_v33 = vmul.f32 %v641_v29, %v1452_v2  ;;  %s1838_s22 = sld [smem:[#allocation3 + $0x75]]  ;;  %v681_v10 = vstv %s1817_s17  ;;  %v1879_v29 = vld [vmem:[%s2122_s0 + $0x8] sm:$0xf] }
  0x83   :  { %v618_v41 = vadd.f32 %v617_v35, %v615_v31  ;;  %s1841_s23 = sld [smem:[#allocation3 + $0x16]] }
  0x84   :  { %s1846_s24 = sld [smem:[#allocation3 + $0x36]] }
  0x85   :  { %v619_v50 = vmax.f32 %v618_v41, 0.0  ;;  %s1849_s25 = sld [smem:[#allocation6 + $0x14]] }
  0x86   :  { %v462_v42 = vld.sshfl [vmem:[#allocation1] sm:$0xff pattern:$0x73625140]  ;;  %v463_v43 = vld.sshfl [vmem:[#allocation1 + $0x8] sm:$0xff pattern:$0x73625140]  ;;  %v709_v13 = vstv %s1828_s20 }
  0x87   :  { %v466_v48 = vsel %vm81_vm0, %v462_v42, 0.0  ;;  %v467_v49 = vsel %vm81_vm0, %v463_v43, 0.0  ;;  %493 = vst [vmem:[#allocation1] ss:$4 sm:$0xff] %v491_v34  ;;  %v587_v34 = vmax.f32 %v586_v28, 0.0  ;;  %v643_v42 = vadd.f32 %v642_v33, %v639_v32  ;;  %s1872_s9 = sld [smem:[#allocation3 + $0x56]] }
  0x88   :  { %v468_v52 = vadd.f32 %v467_v49, %v466_v48  ;;  %v667_v43 = vmul.f32 %v666_v36, %v1440_v0  ;;  %v673_v48 = vstv %s1794_s1  ;;  %v710_v24 = vmul.f32 %v1868_v23, %v709_v13  ;;  %s1874_s10 = sld [smem:[#allocation6 + $0x15]] }
  0x89   :  { %v647_v53 = vadd.f32 %v646_v47, %v643_v42  ;;  %v737_v25 = vstv %s1836_s21  ;;  %s1882_s1 = sld [smem:[#allocation3 + $0x17]]  ;;  %v741_v32 = vstv %s1838_s22  ;;  %v762_v33 = vstv %s1841_s23 }
  0x8a   :  { %469 = vadd.xlane.f32.xlu0 %v468_v52  ;;  %v671_v51 = vadd.f32 %v670_v44, %v667_v43  ;;  %v674_v52 = vmul.f32 %v673_v48, %v1452_v2  ;;  %s1887_s13 = sld [smem:[#allocation3 + $0x37]] }
  0x8b   :  { %v650_v6 = vadd.f32 %v649_v57, %v647_v53  ;;  %v713_v35 = vstv %s1849_s25  ;;  %s1890_s2 = sld [smem:[#allocation3 + $0x76]] }
  0x8c   :  { %v675_v60 = vadd.f32 %v674_v52, %v671_v51  ;;  %s1903_s15 = sld [smem:[#allocation3 + $0x18]] }
  0x8d   :  { %v651_v9 = vmax.f32 %v650_v6, 0.0  ;;  %s1911_s17 = sld [smem:[#allocation6 + $0x16]] }
  0x8e   :  { %v494_v61 = vld.sshfl [vmem:[#allocation1] sm:$0xff pattern:$0x73625140]  ;;  %v495_v62 = vld.sshfl [vmem:[#allocation1 + $0x8] sm:$0xff pattern:$0x73625140]  ;;  %v745_v51 = vstv %s1874_s10 }
  0x8f   :  { %v498_v7 = vsel %vm81_vm0, %v494_v61, 0.0  ;;  %v499_v8 = vsel %vm81_vm0, %v495_v62, 0.0  ;;  %525 = vst [vmem:[#allocation1] ss:$4 sm:$0xff] %v523_v56  ;;  %v701_v56 = vstv %s1804_s14  ;;  %v678_v61 = vmul.f32 %v677_v54, %v1457_v4  ;;  %s1900_s14 = sld [smem:[#allocation3 + $0x77]] }
  0x90   :  { %v500_v11 = vadd.f32 %v499_v8, %v498_v7  ;;  %v699_v62 = vmul.f32 %v698_v55, %v1440_v0  ;;  %v702_v63 = vmul.f32 %v701_v56, %v1447_v1  ;;  %v705_v7 = vstv %s1815_s16  ;;  %s1908_s16 = sld [smem:[#allocation3 + $0x38]] }
  0x91   :  { %v679_v0 = vadd.f32 %v678_v61, %v675_v60  ;;  %v706_v1 = vmul.f32 %v705_v7, %v1452_v2  ;;  %v1854_v2 = vld [vmem:[%s2122_s0] sm:$0xf]  ;;  %s1898_s0 = sld [smem:[#allocation3 + $0x57]]  ;;  %v794_v52 = vstv %s1882_s1  ;;  %v797_v53 = vstv %s1887_s13 }
  0x92   :  { %501 = vadd.xlane.f32.xlu1 %v500_v11  ;;  %v703_v4 = vadd.f32 %v702_v63, %v699_v62  ;;  %v730_v11 = vstv %s1820_s18  ;;  %v773_v54 = vstv %s1890_s2  ;;  %v798_v60 = vmul.f32 %v1860_v19, %v797_v53  ;;  %s1919_s18 = sld [smem:[#allocation3 + $0x58]] }
  0x93   :  { %v682_v16 = vadd.f32 %v681_v10, %v679_v0  ;;  %v731_v18 = vmul.f32 %v1854_v2, %v730_v11  ;;  %v774_v63 = vmul.f32 %v1868_v23, %v773_v54  ;;  %s1924_s20 = sld [smem:[#allocation3 + $0x19]]  ;;  %v777_v10 = vstv %s1911_s17 }
  0x94   :  { %v707_v17 = vadd.f32 %v706_v1, %v703_v4  ;;  %v826_v1 = vstv %s1903_s15  ;;  %s1929_s21 = sld [smem:[#allocation3 + $0x39]] }
  0x95   :  { %v805_v4 = vstv %s1900_s14  ;;  %s1932_s22 = sld [smem:[#allocation3 + $0x78]] }
  0x96   :  { %v526_v20 = vld.sshfl [vmem:[#allocation1] sm:$0xff pattern:$0x73625140]  ;;  %v527_v21 = vld.sshfl [vmem:[#allocation1 + $0x8] sm:$0xff pattern:$0x73625140]  ;;  %v711_v31 = vadd.f32 %v710_v24, %v707_v17 }
  0x97   :  { %v530_v26 = vsel %vm81_vm0, %v526_v20, 0.0  ;;  %v531_v27 = vsel %vm81_vm0, %v527_v21, 0.0  ;;  %557 = vst [vmem:[#allocation1] ss:$4 sm:$0xff] %v555_v12  ;;  %v733_v12 = vstv %s1825_s19  ;;  %s1921_s19 = sld [smem:[#allocation6 + $0x17]] }
  0x98   :  { %v532_v30 = vadd.f32 %v531_v27, %v530_v26  ;;  %v734_v20 = vmul.f32 %v1860_v19, %v733_v12  ;;  %v683_v27 = vmax.f32 %v682_v16, 0.0  ;;  %v714_v44 = vadd.f32 %v713_v35, %v711_v31  ;;  %s1940_s23 = sld [smem:[#allocation3 + $0x59]] }
  0x99   :  { %s1945_s25 = sld [smem:[#allocation3 + $0x1a]] }
  0x9a   :  { %533 = vadd.xlane.f32.xlu2 %v532_v30  ;;  %v735_v28 = vadd.f32 %v734_v20, %v731_v18  ;;  %v738_v30 = vmul.f32 %v1879_v29, %v737_v25  ;;  %v861_v31 = vstv %s1929_s21  ;;  %s1950_s26 = sld [smem:[#allocation3 + $0x3a]] }
  0x9b   :  { %s1953_s27 = sld [smem:[#allocation6 + $0x18]] }
  0x9c   :  { %v739_v38 = vadd.f32 %v738_v30, %v735_v28  ;;  %v858_v30 = vstv %s1924_s20  ;;  %s1961_s28 = sld [smem:[#allocation3 + $0x5a]] }
  0x9d   :  { %v809_v28 = vstv %s1921_s19  ;;  %s1963_s29 = sld [smem:[#allocation6 + $0x19]] }
  0x9e   :  { %v558_v39 = vld.sshfl [vmem:[#allocation1] sm:$0xff pattern:$0x73625140]  ;;  %v559_v40 = vld.sshfl [vmem:[#allocation1 + $0x8] sm:$0xff pattern:$0x73625140] }
  0x9f   :  { %v562_v45 = vsel %vm81_vm0, %v558_v39, 0.0  ;;  %v563_v46 = vsel %vm81_vm0, %v559_v40, 0.0  ;;  %589 = vst [vmem:[#allocation1] ss:$4 sm:$0xff] %v587_v34  ;;  %v765_v34 = vstv %s1846_s24  ;;  %v742_v39 = vmul.f32 %v1868_v23, %v741_v32  ;;  %s1942_s24 = sld [smem:[#allocation3 + $0x79]] }
  0xa0   :  { %v564_v49 = vadd.f32 %v563_v46, %v562_v45  ;;  %v763_v40 = vmul.f32 %v1854_v2, %v762_v33  ;;  %v766_v41 = vmul.f32 %v1860_v19, %v765_v34  ;;  %v769_v45 = vstv %s1872_s9  ;;  %s1966_s30 = sld [smem:[#allocation3 + $0x1b]] }
  0xa1   :  { %v743_v47 = vadd.f32 %v742_v39, %v739_v38  ;;  %v837_v32 = vstv %s1932_s22  ;;  %v862_v38 = vmul.f32 %v1860_v19, %v861_v31  ;;  %s1971_s8 = sld [smem:[#allocation3 + $0x3b]] }
  0xa2   :  { %565 = vadd.xlane.f32.xlu0 %v564_v49  ;;  %v767_v48 = vadd.f32 %v766_v41, %v763_v40  ;;  %v770_v49 = vmul.f32 %v1879_v29, %v769_v45  ;;  %v838_v41 = vmul.f32 %v1868_v23, %v837_v32  ;;  %s1974_s9 = sld [smem:[#allocation3 + $0x7a]] }
  0xa3   :  { %v746_v57 = vadd.f32 %v745_v51, %v743_v47  ;;  %v841_v51 = vstv %s1953_s27  ;;  %s1982_s10 = sld [smem:[#allocation3 + $0x5b]] }
  0xa4   :  { %s1984_s11 = sld [smem:[#allocation3 + $0x7b]] }
  0xa5   :  { %v747_v6 = vmax.f32 %v746_v57, 0.0  ;;  %s1987_s12 = sld [smem:[#allocation3 + $0x1c]] }
  0xa6   :  { %v590_v58 = vld.sshfl [vmem:[#allocation1] sm:$0xff pattern:$0x73625140]  ;;  %v591_v59 = vld.sshfl [vmem:[#allocation1 + $0x8] sm:$0xff pattern:$0x73625140] }
  0xa7   :  { %v594_v3 = vsel %vm81_vm0, %v590_v58, 0.0  ;;  %v595_v5 = vsel %vm81_vm0, %v591_v59, 0.0  ;;  %621 = vst [vmem:[#allocation1] ss:$4 sm:$0xff] %v619_v50  ;;  %v715_v50 = vmax.f32 %v714_v44, 0.0  ;;  %v771_v58 = vadd.f32 %v770_v49, %v767_v48  ;;  %s1992_s1 = sld [smem:[#allocation3 + $0x3c]] }
  0xa8   :  { %v596_v8 = vadd.f32 %v595_v5, %v594_v3  ;;  %v795_v59 = vmul.f32 %v1854_v2, %v794_v52  ;;  %v801_v3 = vstv %s1898_s0  ;;  %v869_v48 = vstv %s1942_s24  ;;  %s1995_s13 = sld [smem:[#allocation6 + $0x1a]] }
  0xa9   :  { %v775_v0 = vadd.f32 %v774_v63, %v771_v58  ;;  %v890_v49 = vstv %s1945_s25  ;;  %s2003_s2 = sld [smem:[#allocation3 + $0x5c]] }
  0xaa   :  { %597 = vadd.xlane.f32.xlu1 %v596_v8  ;;  %v799_v7 = vadd.f32 %v798_v60, %v795_v59  ;;  %v802_v8 = vmul.f32 %v1879_v29, %v801_v3  ;;  %s2005_s0 = sld [smem:[#allocation6 + $0x1b]] }
  0xab   :  { %v778_v20 = vadd.f32 %v777_v10, %v775_v0  ;;  %v925_v0 = vstv %s1971_s8  ;;  %s2008_s14 = sld [smem:[#allocation3 + $0x1d]] }
  0xac   :  { %v803_v13 = vadd.f32 %v802_v8, %v799_v7  ;;  %v873_v7 = vstv %s1963_s29  ;;  %v922_v8 = vstv %s1966_s30  ;;  %s2013_s15 = sld [smem:[#allocation3 + $0x3d]] }
  0xad   :  { %s2024_s17 = sld [smem:[#allocation3 + $0x5d]] }
  0xae   :  { %v622_v14 = vld.sshfl [vmem:[#allocation1] sm:$0xff pattern:$0x73625140]  ;;  %v623_v15 = vld.sshfl [vmem:[#allocation1 + $0x8] sm:$0xff pattern:$0x73625140] }
  0xaf   :  { %v626_v21 = vsel %vm81_vm0, %v622_v14, 0.0  ;;  %v627_v22 = vsel %vm81_vm0, %v623_v15, 0.0  ;;  %653 = vst [vmem:[#allocation1] ss:$4 sm:$0xff] %v651_v9  ;;  %v829_v9 = vstv %s1908_s16  ;;  %v806_v14 = vmul.f32 %v1868_v23, %v805_v4  ;;  %s2016_s16 = sld [smem:[#allocation3 + $0x7c]] }
  0xb0   :  { %v628_v26 = vadd.f32 %v627_v22, %v626_v21  ;;  %v827_v15 = vmul.f32 %v1854_v2, %v826_v1  ;;  %v830_v16 = vmul.f32 %v1860_v19, %v829_v9  ;;  %v833_v21 = vstv %s1919_s18  ;;  %s2026_s18 = sld [smem:[#allocation3 + $0x7d]] }
  0xb1   :  { %v807_v24 = vadd.f32 %v806_v14, %v803_v13  ;;  %v901_v4 = vstv %s1974_s9  ;;  %v926_v13 = vmul.f32 %v1860_v19, %v925_v0  ;;  %s2029_s19 = sld [smem:[#allocation3 + $0x1e]] }
  0xb2   :  { %629 = vadd.xlane.f32.xlu2 %v628_v26  ;;  %v831_v25 = vadd.f32 %v830_v16, %v827_v15  ;;  %v834_v26 = vmul.f32 %v1879_v29, %v833_v21  ;;  %v902_v16 = vmul.f32 %v1868_v23, %v901_v4  ;;  %s2034_s20 = sld [smem:[#allocation3 + $0x3e]] }
  0xb3   :  { %v810_v35 = vadd.f32 %v809_v28, %v807_v24  ;;  %v905_v28 = vstv %s1995_s13  ;;  %s2037_s21 = sld [smem:[#allocation6 + $0x1c]] }
  0xb4   :  { %s2045_s22 = sld [smem:[#allocation3 + $0x5e]] }
  0xb5   :  { %v811_v44 = vmax.f32 %v810_v35, 0.0  ;;  %s2050_s24 = sld [smem:[#allocation3 + $0x7e]] }
  0xb6   :  { %v654_v36 = vld.sshfl [vmem:[#allocation1] sm:$0xff pattern:$0x73625140]  ;;  %v655_v37 = vld.sshfl [vmem:[#allocation1 + $0x8] sm:$0xff pattern:$0x73625140] }
  0xb7   :  { %v658_v42 = vsel %vm81_vm0, %v654_v36, 0.0  ;;  %v659_v43 = vsel %vm81_vm0, %v655_v37, 0.0  ;;  %685 = vst [vmem:[#allocation1] ss:$4 sm:$0xff] %v683_v27  ;;  %v779_v27 = vmax.f32 %v778_v20, 0.0  ;;  %v835_v36 = vadd.f32 %v834_v26, %v831_v25  ;;  %s2055_s25 = sld [smem:[#allocation3 + $0x1f]] }
  0xb8   :  { %v660_v46 = vadd.f32 %v659_v43, %v658_v42  ;;  %v859_v37 = vmul.f32 %v1854_v2, %v858_v30  ;;  %v865_v42 = vstv %s1940_s23  ;;  %v933_v25 = vstv %s1984_s11  ;;  %s2047_s23 = sld [smem:[#allocation6 + $0x1d]] }
  0xb9   :  { %v839_v47 = vadd.f32 %v838_v41, %v835_v36  ;;  %v954_v26 = vstv %s1987_s12  ;;  %s2066_s27 = sld [smem:[#allocation3 + $0x5f]] }
  0xba   :  { %661 = vadd.xlane.f32.xlu0 %v660_v46  ;;  %v863_v45 = vadd.f32 %v862_v38, %v859_v37  ;;  %v866_v46 = vmul.f32 %v1879_v29, %v865_v42  ;;  %s2075_s29 = sld [smem:[#allocation3 + $0x7f]] }
  0xbb   :  { %v842_v60 = vadd.f32 %v841_v51, %v839_v47  ;;  %v989_v47 = vstv %s2013_s15  ;;  %s1322_s30 = sld [smem:[#allocation6 + $0x1f]] }
  0xbc   :  { %v867_v54 = vadd.f32 %v866_v46, %v863_v45  ;;  %v937_v45 = vstv %s2005_s0  ;;  %v986_v46 = vstv %s2008_s14 }
  0xbe   :  { %v686_v55 = vld.sshfl [vmem:[#allocation1] sm:$0xff pattern:$0x73625140]  ;;  %v687_v56 = vld.sshfl [vmem:[#allocation1 + $0x8] sm:$0xff pattern:$0x73625140] }
  0xbf   :  { %v690_v61 = vsel %vm81_vm0, %v686_v55, 0.0  ;;  %v691_v62 = vsel %vm81_vm0, %v687_v56, 0.0  ;;  %717 = vst [vmem:[#allocation1] ss:$4 sm:$0xff] %v715_v50  ;;  %v893_v50 = vstv %s1950_s26  ;;  %v870_v55 = vmul.f32 %v1868_v23, %v869_v48  ;;  %s2058_s26 = sld [smem:[#allocation3 + $0x3f]] }
  0xc0   :  { %v692_v5 = vadd.f32 %v691_v62, %v690_v61  ;;  %v891_v56 = vmul.f32 %v1854_v2, %v890_v49  ;;  %v894_v57 = vmul.f32 %v1860_v19, %v893_v50  ;;  %v897_v61 = vstv %s1961_s28  ;;  %s2071_s28 = sld [smem:[#allocation6 + $0x1e]] }
  0xc1   :  { %v871_v63 = vadd.f32 %v870_v55, %v867_v54  ;;  %v965_v48 = vstv %s2016_s16  ;;  %v990_v54 = vmul.f32 %v1860_v19, %v989_v47 }
  0xc2   :  { %693 = vadd.xlane.f32.xlu1 %v692_v5  ;;  %v895_v3 = vadd.f32 %v894_v57, %v891_v56  ;;  %v898_v5 = vmul.f32 %v1879_v29, %v897_v61  ;;  %v966_v57 = vmul.f32 %v1868_v23, %v965_v48 }
  0xc3   :  { %v874_v10 = vadd.f32 %v873_v7, %v871_v63  ;;  %v969_v7 = vstv %s2037_s21 }
  0xc5   :  { %v875_v20 = vmax.f32 %v874_v10, 0.0 }
  0xc6   :  { %v718_v11 = vld.sshfl [vmem:[#allocation1] sm:$0xff pattern:$0x73625140]  ;;  %v719_v12 = vld.sshfl [vmem:[#allocation1 + $0x8] sm:$0xff pattern:$0x73625140] }
  0xc7   :  { %v722_v17 = vsel %vm81_vm0, %v718_v11, 0.0  ;;  %v723_v18 = vsel %vm81_vm0, %v719_v12, 0.0  ;;  %749 = vst [vmem:[#allocation1] ss:$4 sm:$0xff] %v747_v6  ;;  %v843_v6 = vmax.f32 %v842_v60, 0.0  ;;  %v899_v11 = vadd.f32 %v898_v5, %v895_v3 }
  0xc8   :  { %v724_v22 = vadd.f32 %v723_v18, %v722_v17  ;;  %v923_v12 = vmul.f32 %v1854_v2, %v922_v8  ;;  %v929_v17 = vstv %s1982_s10  ;;  %v997_v3 = vstv %s2026_s18 }
  0xc9   :  { %v903_v24 = vadd.f32 %v902_v16, %v899_v11  ;;  %v1018_v5 = vstv %s2029_s19 }
  0xca   :  { %725 = vadd.xlane.f32.xlu2 %v724_v22  ;;  %v927_v21 = vadd.f32 %v926_v13, %v923_v12  ;;  %v930_v22 = vmul.f32 %v1879_v29, %v929_v17 }
  0xcb   :  { %v906_v38 = vadd.f32 %v905_v28, %v903_v24  ;;  %v1050_v24 = vstv %s2055_s25 }
  0xcc   :  { %v931_v32 = vadd.f32 %v930_v22, %v927_v21  ;;  %v1001_v21 = vstv %s2047_s23  ;;  %v1029_v22 = vstv %s2050_s24 }
  0xce   :  { %v750_v33 = vld.sshfl [vmem:[#allocation1] sm:$0xff pattern:$0x73625140]  ;;  %v751_v34 = vld.sshfl [vmem:[#allocation1 + $0x8] sm:$0xff pattern:$0x73625140] }
  0xcf   :  { %v754_v39 = vsel %vm81_vm0, %v750_v33, 0.0  ;;  %v755_v40 = vsel %vm81_vm0, %v751_v34, 0.0  ;;  %781 = vst [vmem:[#allocation1] ss:$4 sm:$0xff] %v779_v27  ;;  %v957_v27 = vstv %s1992_s1  ;;  %v934_v33 = vmul.f32 %v1868_v23, %v933_v25 }
  0xd0   :  { %v756_v43 = vadd.f32 %v755_v40, %v754_v39  ;;  %v955_v34 = vmul.f32 %v1854_v2, %v954_v26  ;;  %v958_v35 = vmul.f32 %v1860_v19, %v957_v27  ;;  %v961_v39 = vstv %s2003_s2 }
  0xd1   :  { %v935_v41 = vadd.f32 %v934_v33, %v931_v32  ;;  %v1053_v25 = vstv %s2058_s26 }
  0xd2   :  { %757 = vadd.xlane.f32.xlu0 %v756_v43  ;;  %v959_v42 = vadd.f32 %v958_v35, %v955_v34  ;;  %v962_v43 = vmul.f32 %v1879_v29, %v961_v39  ;;  %v1051_v34 = vmul.f32 %v1854_v2, %v1050_v24  ;;  %v1054_v35 = vmul.f32 %v1860_v19, %v1053_v25  ;;  %v86_v39 = vpop.xlane.xlu0 %85 }
  0xd3   :  { %v938_v51 = vadd.f32 %v937_v45, %v935_v41  ;;  %88 = vst.msk [vmem:[#allocation2] sm:$0x3] %vm87_vm1, %v86_v39  ;;  %v214_v45 = vpop.xlane.xlu2 %213  ;;  %vm567_vm1 = vcmask 124024   ;;  %v1082_v39 = vld [vmem:[%s2125_s3] sm:$0xff] }
  0xd5   :  { %v939_v60 = vmax.f32 %v938_v51, 0.0 }
  0xd6   :  { %v782_v52 = vld.sshfl [vmem:[#allocation1] sm:$0xff pattern:$0x73625140]  ;;  %v783_v53 = vld.sshfl [vmem:[#allocation1 + $0x8] sm:$0xff pattern:$0x73625140] }
  0xd7   :  { %v786_v58 = vsel %vm81_vm0, %v782_v52, 0.0  ;;  %v787_v59 = vsel %vm81_vm0, %v783_v53, 0.0  ;;  %813 = vst [vmem:[#allocation1] ss:$4 sm:$0xff] %v811_v44  ;;  %v907_v44 = vmax.f32 %v906_v38, 0.0  ;;  %v963_v52 = vadd.f32 %v962_v43, %v959_v42 }
  0xd8   :  { %v788_v62 = vadd.f32 %v787_v59, %v786_v58  ;;  %v987_v53 = vmul.f32 %v1854_v2, %v986_v46  ;;  %v993_v58 = vstv %s2024_s17  ;;  %v1033_v42 = vstv %s2071_s28 }
  0xd9   :  { %v967_v63 = vadd.f32 %v966_v57, %v963_v52  ;;  %v1055_v43 = vadd.f32 %v1054_v35, %v1051_v34  ;;  %v1061_v46 = vstv %s2075_s29  ;;  %v1065_v57 = vstv %s1322_s30 }
  0xda   :  { %789 = vadd.xlane.f32.xlu1 %v788_v62  ;;  %v991_v61 = vadd.f32 %v990_v54, %v987_v53  ;;  %v994_v62 = vmul.f32 %v1879_v29, %v993_v58  ;;  %v1062_v51 = vmul.f32 %v1868_v23, %v1061_v46  ;;  %v1115_v46 = vld [vmem:[%s2127_s5] sm:$0xff] }
  0xdb   :  { %v970_v13 = vadd.f32 %v969_v7, %v967_v63 }
  0xdc   :  { %v995_v4 = vadd.f32 %v994_v62, %v991_v61 }
  0xde   :  { %v814_v1 = vld.sshfl [vmem:[#allocation1] sm:$0xff pattern:$0x73625140]  ;;  %v815_v9 = vld.sshfl [vmem:[#allocation1 + $0x8] sm:$0xff pattern:$0x73625140] }
  0xdf   :  { %v818_v14 = vsel %vm81_vm0, %v814_v1, 0.0  ;;  %v819_v15 = vsel %vm81_vm0, %v815_v9, 0.0  ;;  %845 = vst [vmem:[#allocation1] ss:$4 sm:$0xff] %v843_v6  ;;  %v1021_v6 = vstv %s2034_s20  ;;  %v998_v1 = vmul.f32 %v1868_v23, %v997_v3  ;;  %s1390_s20 = smov [#allocation8]  }
  0xe0   :  { %v820_v18 = vadd.f32 %v819_v15, %v818_v14  ;;  %v1019_v9 = vmul.f32 %v1854_v2, %v1018_v5  ;;  %v1022_v10 = vmul.f32 %v1860_v19, %v1021_v6  ;;  %v1025_v14 = vstv %s2045_s22  ;;  %s1152_s21 = sshll.u32 %s1390_s20, 4  ;;  %s1153_s21 = int_to_ptr.vmem [resolvable:$true] %s1152_s21 }
  0xe1   :  { %v999_v16 = vadd.f32 %v998_v1, %v995_v4 }
  0xe2   :  { %821 = vadd.xlane.f32.xlu2 %v820_v18  ;;  %v1023_v17 = vadd.f32 %v1022_v10, %v1019_v9  ;;  %v1026_v18 = vmul.f32 %v1879_v29, %v1025_v14 }
  0xe3   :  { %v1002_v28 = vadd.f32 %v1001_v21, %v999_v16 }
  0xe5   :  { %v1003_v41 = vmax.f32 %v1002_v28, 0.0 }
  0xe6   :  { %v846_v30 = vld.sshfl [vmem:[#allocation1] sm:$0xff pattern:$0x73625140]  ;;  %v847_v31 = vld.sshfl [vmem:[#allocation1 + $0x8] sm:$0xff pattern:$0x73625140] }
  0xe7   :  { %v850_v36 = vsel %vm81_vm0, %v846_v30, 0.0  ;;  %v851_v37 = vsel %vm81_vm0, %v847_v31, 0.0  ;;  %877 = vst [vmem:[#allocation1] ss:$4 sm:$0xff] %v875_v20  ;;  %v971_v20 = vmax.f32 %v970_v13, 0.0  ;;  %v1027_v30 = vadd.f32 %v1026_v18, %v1023_v17 }
  0xe8   :  { %v852_v40 = vadd.f32 %v851_v37, %v850_v36  ;;  %v1030_v31 = vmul.f32 %v1868_v23, %v1029_v22  ;;  %v1057_v37 = vstv %s2066_s27 }
  0xea   :  { %853 = vadd.xlane.f32.xlu0 %v852_v40  ;;  %v1031_v38 = vadd.f32 %v1030_v31, %v1027_v30  ;;  %v150_v40 = vpop.xlane.xlu1 %149 }
  0xec   :  { %v1034_v48 = vadd.f32 %v1033_v42, %v1031_v38  ;;  %v1083_v38 = vld [vmem:[%s2125_s3 + $0x8] sm:$0xff] }
  0xee   :  { %v878_v49 = vld.sshfl [vmem:[#allocation1] sm:$0xff pattern:$0x73625140]  ;;  %v879_v50 = vld.sshfl [vmem:[#allocation1 + $0x8] sm:$0xff pattern:$0x73625140] }
  0xef   :  { %v882_v55 = vsel %vm81_vm0, %v878_v49, 0.0  ;;  %v883_v56 = vsel %vm81_vm0, %v879_v50, 0.0  ;;  %909 = vst [vmem:[#allocation1] ss:$4 sm:$0xff] %v907_v44  ;;  %v1058_v44 = vmul.f32 %v1879_v29, %v1057_v37  ;;  %v118_v29 = vpop.xlane.xlu0 %117  ;;  %v1035_v54 = vmax.f32 %v1034_v48, 0.0  ;;  %v1084_v37 = vld [vmem:[%s2125_s3 + $0x10] sm:$0xff] }
  0xf0   :  { %v884_v59 = vadd.f32 %v883_v56, %v882_v55  ;;  %120 = vst.msk [vmem:[#allocation2] sm:$0x3] %vm119_vm2, %v118_v29  ;;  %v246_v56 = vpop.xlane.xlu2 %245  ;;  %vm599_vm2 = vcmask 132224  }
  0xf1   :  { %v1059_v50 = vadd.f32 %v1058_v44, %v1055_v43  ;;  %152 = vst.msk [vmem:[#allocation2] sm:$0x3] %vm151_vm3, %v150_v40  ;;  %vm631_vm3 = vcmask 140424  }
  0xf2   :  { %885 = vadd.xlane.f32.xlu1 %v884_v59  ;;  %v182_v53 = vpop.xlane.xlu1 %181 }
  0xf3   :  { %v1063_v55 = vadd.f32 %v1062_v51, %v1059_v50  ;;  %184 = vst.msk [vmem:[#allocation2] sm:$0x3] %vm183_vm4, %v182_v53  ;;  %vm695_vm4 = vcmask 156824  }
  0xf4   :  { %216 = vst.msk [vmem:[#allocation2] sm:$0x3] %vm215_vm5, %v214_v45  ;;  %vm727_vm5 = vcmask 165024   ;;  %v1116_v45 = vld [vmem:[%s2127_s5 + $0x8] sm:$0xff]  ;;  %s1154_s5 = sshll.u32 %s2129_s7, 4  ;;  %s1155_s5 = int_to_ptr.hbm [resolvable:$true] %s1154_s5 }
  0xf5   :  { %v1066_v61 = vadd.f32 %v1065_v57, %v1063_v55  ;;  %248 = vst.msk [vmem:[#allocation2] sm:$0x3] %vm247_vm6, %v246_v56  ;;  %vm759_vm6 = vcmask 173224   ;;  %1139 = vmatpush.msra.mxu1 %v1116_v45 }
  0xf6   :  { %v910_v8 = vld.sshfl [vmem:[#allocation1] sm:$0xff pattern:$0x73625140]  ;;  %v911_v0 = vld.sshfl [vmem:[#allocation1 + $0x8] sm:$0xff pattern:$0x73625140] }
  0xf7   :  { %v914_v11 = vsel %vm81_vm0, %v910_v8, 0.0  ;;  %v915_v12 = vsel %vm81_vm0, %v911_v0, 0.0  ;;  %941 = vst [vmem:[#allocation1] ss:$4 sm:$0xff] %v939_v60  ;;  %v278_v63 = vpop.xlane.xlu0 %277  ;;  %v1067_v5 = vmax.f32 %v1066_v61, 0.0  ;;  %1140 = vmatpush.msra.mxu1 %v1115_v46 }
  0xf8   :  { %v916_v15 = vadd.f32 %v915_v12, %v914_v11  ;;  %280 = vst.msk [vmem:[#allocation2] sm:$0x3] %vm279_vm7, %v278_v63  ;;  %v342_v6 = vpop.xlane.xlu2 %341  ;;  %vm791_vm7 = vcmask 181424  }
  0xfa   :  { %917 = vadd.xlane.f32.xlu2 %v916_v15  ;;  %v310_v3 = vpop.xlane.xlu1 %309 }
  0xfb   :  { %312 = vst.msk [vmem:[#allocation2] sm:$0x3] %vm311_vm8, %v310_v3  ;;  %vm823_vm8 = vcmask 189624  }
  0xfc   :  { %344 = vst.msk [vmem:[#allocation2] sm:$0x3] %vm343_vm9, %v342_v6  ;;  %vm855_vm9 = vcmask 197824  }
  0xfe   :  { %v942_v26 = vld.sshfl [vmem:[#allocation1] sm:$0xff pattern:$0x73625140]  ;;  %v943_v27 = vld.sshfl [vmem:[#allocation1 + $0x8] sm:$0xff pattern:$0x73625140] }
  0xff   :  { %v946_v32 = vsel %vm81_vm0, %v942_v26, 0.0  ;;  %v947_v33 = vsel %vm81_vm0, %v943_v27, 0.0  ;;  %973 = vst [vmem:[#allocation1] ss:$4 sm:$0xff] %v971_v20  ;;  %v374_v9 = vpop.xlane.xlu0 %373 }
 0x100   :  { %v948_v36 = vadd.f32 %v947_v33, %v946_v32  ;;  %376 = vst.msk [vmem:[#allocation2] sm:$0x3] %vm375_vm10, %v374_v9  ;;  %v438_v11 = vpop.xlane.xlu2 %437  ;;  %vm887_vm10 = vcmask 206024  }
 0x102   :  { %949 = vadd.xlane.f32.xlu0 %v948_v36  ;;  %v406_v10 = vpop.xlane.xlu1 %405  ;;  %v1085_v36 = vld [vmem:[%s2125_s3 + $0x18] sm:$0xff] }
 0x103   :  { %408 = vst.msk [vmem:[#allocation2] sm:$0x3] %vm407_vm11, %v406_v10  ;;  %vm919_vm11 = vcmask 214224   ;;  %1106 = vmatpush.msra.mxu0 %v1085_v36 }
 0x104   :  { %440 = vst.msk [vmem:[#allocation2] sm:$0x3] %vm439_vm12, %v438_v11  ;;  %vm951_vm12 = vcmask 222424  }
 0x105   :  { %1107 = vmatpush.msra.mxu0 %v1084_v37 }
 0x106   :  { %v974_v47 = vld.sshfl [vmem:[#allocation1] sm:$0xff pattern:$0x73625140]  ;;  %v975_v2 = vld.sshfl [vmem:[#allocation1 + $0x8] sm:$0xff pattern:$0x73625140] }
 0x107   :  { %v978_v19 = vsel %vm81_vm0, %v974_v47, 0.0  ;;  %v979_v49 = vsel %vm81_vm0, %v975_v2, 0.0  ;;  %1005 = vst [vmem:[#allocation1] ss:$4 sm:$0xff] %v1003_v41  ;;  %v470_v17 = vpop.xlane.xlu0 %469  ;;  %1108 = vmatpush.msra.mxu0 %v1083_v38  ;;  %v1328_v47 = vld [vmem:[%s2126_s4] ss:$0 sm:$0xff] }
 0x108   :  { %v980_v52 = vadd.f32 %v979_v49, %v978_v19  ;;  %472 = vst.msk [vmem:[#allocation2] sm:$0x3] %vm471_vm13, %v470_v17  ;;  %vm983_vm13 = vcmask 230624   ;;  %v1329_v49 = vld [vmem:[%s2128_s6] ss:$0 sm:$0xff] }
 0x109   :  { %1109 = vmatpush.msra.mxu0 %v1082_v39 }
 0x10a   :  { %981 = vadd.xlane.f32.xlu1 %v980_v52  ;;  %v502_v18 = vpop.xlane.xlu1 %501 }
 0x10b   :  { %504 = vst.msk [vmem:[#allocation2] sm:$0x3] %vm503_vm14, %v502_v18  ;;  %vm1015_vm14 = vcmask 238824  }
 0x10d   :  { %v534_v20 = vpop.xlane.xlu2 %533 }
 0x10e   :  { %v1006_v58 = vld.sshfl [vmem:[#allocation1] sm:$0xff pattern:$0x73625140]  ;;  %v1007_v59 = vld.sshfl [vmem:[#allocation1 + $0x8] sm:$0xff pattern:$0x73625140] }
 0x10f   :  { %v1010_v23 = vsel %vm81_vm0, %v1006_v58, 0.0  ;;  %v1011_v60 = vsel %vm81_vm0, %v1007_v59, 0.0  ;;  %1037 = vst [vmem:[#allocation1] ss:$4 sm:$0xff] %v1035_v54 }
 0x110   :  { %v1012_v62 = vadd.f32 %v1011_v60, %v1010_v23  ;;  %536 = vst.msk [vmem:[#allocation2] sm:$0x3] %vm535_vm15, %v534_v20  ;;  %vm1047_vm15 = vcmask 247024  }
 0x112   :  { %1013 = vadd.xlane.f32.xlu2 %v1012_v62 }
 0x115   :  { %v566_v21 = vpop.xlane.xlu0 %565 }
 0x116   :  { %v1038_v7 = vld.sshfl [vmem:[#allocation1] sm:$0xff pattern:$0x73625140]  ;;  %v1039_v8 = vld.sshfl [vmem:[#allocation1 + $0x8] sm:$0xff pattern:$0x73625140] }
 0x117   :  { %v1042_v0 = vsel %vm81_vm0, %v1038_v7, 0.0  ;;  %v1043_v4 = vsel %vm81_vm0, %v1039_v8, 0.0  ;;  %1069 = vst [vmem:[#allocation1] ss:$4 sm:$0xff] %v1067_v5 }
 0x118   :  { %v1044_v1 = vadd.f32 %v1043_v4, %v1042_v0  ;;  %568 = vst.msk [vmem:[#allocation2] sm:$0x3] %vm567_vm1, %v566_v21  ;;  %vm1079_vm1 = vcmask 255224  }
 0x11a   :  { %1045 = vadd.xlane.f32.xlu0 %v1044_v1 }
 0x11d   :  { %v598_v22 = vpop.xlane.xlu1 %597 }
 0x11e   :  { %v1070_v12 = vld.sshfl [vmem:[#allocation1] sm:$0xff pattern:$0x73625140]  ;;  %v1071_v13 = vld.sshfl [vmem:[#allocation1 + $0x8] sm:$0xff pattern:$0x73625140] }
 0x11f   :  { %v1074_v14 = vsel %vm81_vm0, %v1070_v12, 0.0  ;;  %v1075_v15 = vsel %vm81_vm0, %v1071_v13, 0.0  ;;  %600 = vst.msk [vmem:[#allocation2] sm:$0x3] %vm599_vm2, %v598_v22  ;;  %vm663_vm0 = vcmask 148624   ;;  %vm1090_vm2 = vcmask 261120  }
 0x120   :  { %v1076_v16 = vadd.f32 %v1075_v15, %v1074_v14 }
 0x122   :  { %1077 = vadd.xlane.f32.xlu1 %v1076_v16 }
 0x125   :  { %v630_v24 = vpop.xlane.xlu2 %629 }
 0x126   :  { %632 = vst.msk [vmem:[#allocation2] sm:$0x3] %vm631_vm3, %v630_v24  ;;  %vm1121_vm3 = vcmask 130048  }
 0x12d   :  { %v662_v25 = vpop.xlane.xlu0 %661 }
 0x12e   :  { %664 = vst.msk [vmem:[#allocation2] sm:$0x3] %vm663_vm0, %v662_v25  ;;  %vm1145_vm0 = vcmask 123904  }
 0x135   :  { %v694_v26 = vpop.xlane.xlu1 %693 }
 0x136   :  { %696 = vst.msk [vmem:[#allocation2] sm:$0x3] %vm695_vm4, %v694_v26 }
 0x13d   :  { %v726_v27 = vpop.xlane.xlu2 %725 }
 0x13e   :  { %728 = vst.msk [vmem:[#allocation2] sm:$0x3] %vm727_vm5, %v726_v27 }
 0x145   :  { %v758_v28 = vpop.xlane.xlu0 %757 }
 0x146   :  { %760 = vst.msk [vmem:[#allocation2] sm:$0x3] %vm759_vm6, %v758_v28 }
 0x14d   :  { %v790_v30 = vpop.xlane.xlu1 %789 }
 0x14e   :  { %792 = vst.msk [vmem:[#allocation2] sm:$0x3] %vm791_vm7, %v790_v30 }
 0x155   :  { %v822_v31 = vpop.xlane.xlu2 %821 }
 0x156   :  { %824 = vst.msk [vmem:[#allocation2] sm:$0x3] %vm823_vm8, %v822_v31 }
 0x15d   :  { %v854_v32 = vpop.xlane.xlu0 %853 }
 0x15e   :  { %856 = vst.msk [vmem:[#allocation2] sm:$0x3] %vm855_vm9, %v854_v32 }
 0x165   :  { %v886_v33 = vpop.xlane.xlu1 %885 }
 0x166   :  { %888 = vst.msk [vmem:[#allocation2] sm:$0x3] %vm887_vm10, %v886_v33 }
 0x16d   :  { %v918_v34 = vpop.xlane.xlu2 %917 }
 0x16e   :  { %920 = vst.msk [vmem:[#allocation2] sm:$0x3] %vm919_vm11, %v918_v34 }
 0x175   :  { %v950_v35 = vpop.xlane.xlu0 %949 }
 0x176   :  { %952 = vst.msk [vmem:[#allocation2] sm:$0x3] %vm951_vm12, %v950_v35 }
 0x17d   :  { %v982_v40 = vpop.xlane.xlu1 %981 }
 0x17e   :  { %984 = vst.msk [vmem:[#allocation2] sm:$0x3] %vm983_vm13, %v982_v40 }
 0x185   :  { %v1014_v41 = vpop.xlane.xlu2 %1013 }
 0x186   :  { %1016 = vst.msk [vmem:[#allocation2] sm:$0x3] %vm1015_vm14, %v1014_v41 }
 0x18d   :  { %v1046_v42 = vpop.xlane.xlu0 %1045 }
 0x18e   :  { %1048 = vst.msk [vmem:[#allocation2] sm:$0x3] %vm1047_vm15, %v1046_v42 }
 0x195   :  { %v1078_v43 = vpop.xlane.xlu1 %1077 }
 0x196   :  { %1080 = vst.msk [vmem:[#allocation2] sm:$0x3] %vm1079_vm1, %v1078_v43 }
 0x19d   :  { %v1081_v44 = vld [vmem:[#allocation2] sm:$0x3] }
 0x19e   :  { %1323 = vmatmul.msk.f32.vlgmr.msra.gmra.mxu0 %vm1090_vm2, %v1081_v44 }
 0x21b   :  { %v1111_v2 = vpop.f32.mrf.mxu0 }
 0x21c   :  { %v1112_v48 = vadd.f32 %v1328_v47, %v1111_v2 }
 0x21e   :  { %v1114_v19 = vmax.f32 %v1112_v48, 0.0 }
 0x220   :  { %1324 = vmatmul.msk.f32.vlgmr.msra.gmra.mxu1 %vm1121_vm3, %v1114_v19 }
 0x29d   :  { %v1142_v50 = vpop.f32.mrf.mxu1 }
 0x29e   :  { %v1143_v51 = vadd.f32 %v1329_v49, %v1142_v50 }
 0x2a0   :  { %1146 = vst.msk [vmem:[#allocation8] sm:$0x3] %vm1145_vm0, %v1143_v51 }
 0x2a1   :  { %1157 = dma.vmem_to_hbm [thread:$0]  %s1153_s21, 32, %s1155_s5, [#allocation4]  }
 0x2a2   :  { %1386 = dma.done.wait [#allocation4], 32  }
 0x2a3   :  { %1387 = vsyncadd [#allocation4], 4294967264 }
 0x2a4   :  { %1162 = vsyncpa [#allocation4], 1 }
 0x2a5   :  { %1163 = vsyncpa [#allocation5], 1 }
 0x2a6   :  { %1164 = vsyncpa [#allocation7], 1 }

</bundles_post_ra>
